<compile_context>
chip_gen: v7x
topology: tpu7x:2x2x1
jax: 0.10.0
libtpu: 0.0.40
codegen_flags: <defaults>
</compile_context>

<pallas_src>
import math

import jax
import jax.numpy as jnp
from jax.experimental import pallas as pl
from jax.experimental.pallas import tpu as pltpu


def _round_up(v, m):
    return -(-v // m) * m


def _gmm_fused_kernel(x_ref, w_ref, b_ref, out_ref):
    """One batch tile: fused (means | log_stds) = x @ W_fused + b_fused."""
    acc = jnp.dot(x_ref[...], w_ref[...], preferred_element_type=jnp.float32)
    out_ref[...] = (acc + b_ref[...]).astype(out_ref.dtype)


def fuse_gmm_params(w_means, b_means, w_log_stds, b_log_stds):
    """Fuse the two linear heads ONCE at parameter-setup time.

    Weights are stored pre-transposed: (num_inputs, num_mixture).
    Returns (w_fused (num_inputs, 2*M), b_fused (1, 2*M))."""
    w_fused = jnp.concatenate([w_means, w_log_stds], axis=1)
    b_fused = jnp.concatenate([b_means, b_log_stds]).reshape(1, -1)
    return w_fused, b_fused


def gaussian_mixture_forward(
    x,
    w_fused,
    b_fused,
    *,
    tb=None,
    use_bf16=True,
    allow_xla_fallback=True,
):
    """Pallas forward pass of GaussianMixtureModel.

    x: (B, num_inputs).  w_fused: (num_inputs, 2*num_mixture), b_fused: (1, 2*M)
    (from fuse_gmm_params).  Returns (means, log_stds), each (B, num_mixture),
    in x.dtype.  Accumulation is always f32.
    """
    B, num_inputs = x.shape
    b_fused = b_fused.reshape(1, -1)
    n_out = b_fused.shape[1]
    num_mixture = n_out // 2
    assert w_fused.shape == (num_inputs, n_out)

    out_dtype = x.dtype
    b_f32 = b_fused.astype(jnp.float32)

    # ---- Small-batch fast path: Pallas launch overhead would dominate.
    if allow_xla_fallback and 2 * B * num_inputs * n_out < 1_000_000:
        acc = jnp.dot(x, w_fused.astype(x.dtype),
                      preferred_element_type=jnp.float32) + b_f32
        fused = acc.astype(out_dtype)
        return fused[:, :num_mixture], fused[:, num_mixture:]

    # ---- Matched I/O dtype for the MXU path (x and W must be the SAME dtype).
    if use_bf16:
        io_dtype = jnp.bfloat16
    else:
        io_dtype = jnp.promote_types(x.dtype, w_fused.dtype)
    x_c = x.astype(io_dtype)
    w_c = w_fused.astype(io_dtype)

    io_bytes = jnp.dtype(io_dtype).itemsize
    out_bytes = jnp.dtype(out_dtype).itemsize
    # Sublane packing: f32 -> 8 rows / vreg, bf16 -> 16, int8/fp8 -> 32.
    sublane = {4: 8, 2: 16, 1: 32}.get(io_bytes, 8)

    # ---- Generation-aware VMEM budget / tile cap.
    try:
        info = pltpu.get_tpu_info()
        vmem_cap = int(getattr(info, "vmem_capacity_bytes", 64 << 20))
    except Exception:
        vmem_cap = 64 << 20  # conservative (v7x-class) fallback
    small_vmem_chip = vmem_cap <= (96 << 20)  # v7x-class: 64 MiB VMEM, 2 TCs
    if small_vmem_chip:
        vmem_budget = 32 << 20
        tb_cap = 8192
    else:  # v5e / v6e: 128 MiB VMEM, 1 TC
        vmem_budget = 64 << 20
        tb_cap = 16384

    # ---- Layout-aware footprint: last dims pad to 128 lanes in VMEM.
    lanes_in = _round_up(num_inputs, 128)
    lanes_out = _round_up(n_out, 128)
    # Per batch-row cost: double-buffered x tile + double-buffered output tile.
    per_row = (lanes_in * io_bytes + lanes_out * out_bytes) * 2
    # Resident (but still buffered) weight slab + bias.
    resident = (_round_up(num_inputs, sublane) * lanes_out * io_bytes
                + 8 * lanes_out * 4) * 2

    b_rounded = _round_up(B, sublane)  # batch rounded up to sublane multiple

    if tb is None:
        avail = max(vmem_budget - resident, per_row * sublane)
        tb = max(sublane, avail // per_row)
        tb = min(tb, tb_cap)
    # Round to a sublane multiple and don't exceed the (padded) batch.
    tb = max(sublane, (tb // sublane) * sublane)
    tb = min(tb, b_rounded)
    # On 2-TC chips make sure the "parallel" grid axis has >= 2 steps so both
    # TensorCores get work (only when the batch is big enough to be worth it).
    if small_vmem_chip and b_rounded >= 2048:
        half = _round_up(b_rounded // 2, sublane)
        tb = min(tb, max(sublane, half))

    # ---- Pad batch to a tile multiple (handles arbitrary B).
    b_pad = _round_up(B, tb)
    if b_pad != B:
        x_c = jnp.pad(x_c, ((0, b_pad - B), (0, 0)))

    grid = (b_pad // tb,)

    # ---- Actual (lane-padded, double-buffered) VMEM footprint -> limit.
    footprint = tb * per_row + resident
    vmem_limit = int(min(max(footprint + (8 << 20), 32 << 20),
                         vmem_cap - (4 << 20)))

    x_spec = pl.BlockSpec((tb, num_inputs), lambda i: (i, 0))
    w_spec = pl.BlockSpec((num_inputs, n_out), lambda i: (0, 0))  # resident
    b_spec = pl.BlockSpec((1, n_out), lambda i: (0, 0))           # resident
    out_spec = pl.BlockSpec((tb, n_out), lambda i: (i, 0))

    cost = pl.CostEstimate(
        flops=2 * b_pad * num_inputs * n_out,
        transcendentals=0,
        bytes_accessed=(
            b_pad * num_inputs * io_bytes
            + num_inputs * n_out * io_bytes
            + n_out * 4
            + b_pad * n_out * out_bytes
        ),
    )

    fused = pl.pallas_call(
        _gmm_fused_kernel,
        out_shape=jax.ShapeDtypeStruct((b_pad, n_out), out_dtype),
        grid_spec=pltpu.PrefetchScalarGridSpec(
            num_scalar_prefetch=0,
            grid=grid,
            in_specs=[x_spec, w_spec, b_spec],
            out_specs=out_spec,
        ),
        compiler_params=pltpu.CompilerParams(
            dimension_semantics=("parallel",),  # megacore sharding on 2-TC chips
            vmem_limit_bytes=vmem_limit,
        ),
        cost_estimate=cost,
    )(x_c, w_c, b_f32)

    # Free XLA slices: drop batch padding and split the fused heads.
    means = fused[:B, :num_mixture]
    log_stds = fused[:B, num_mixture:]
    return means, log_stds


def init_linear_params(key, num_inputs, num_mixture):
    """Deterministic nn.Linear-style init: U(-1/sqrt(fan_in), 1/sqrt(fan_in)).

    Returns weight already transposed to (num_inputs, num_mixture)."""
    k_w, k_b = jax.random.split(key)
    bound = 1.0 / math.sqrt(num_inputs)
    w = jax.random.uniform(
        k_w, (num_inputs, num_mixture), jnp.float32, -bound, bound
    )
    b = jax.random.uniform(k_b, (num_mixture,), jnp.float32, -bound, bound)
    return w, b


if __name__ == "__main__":
    num_inputs, num_mixture = 32, 16

    key = jax.random.PRNGKey(0)
    k_x, k_m, k_l, k_x2 = jax.random.split(key, 4)

    w_means, b_means = init_linear_params(k_m, num_inputs, num_mixture)
    w_log_stds, b_log_stds = init_linear_params(k_l, num_inputs, num_mixture)
    # Fuse the two heads ONCE (hoisted out of the per-call path).
    w_fused, b_fused = fuse_gmm_params(w_means, b_means, w_log_stds, b_log_stds)

    # --- 1. Small batch (module-sized demo): XLA fast path, exact check. ---
    B = 16
    x = jax.random.normal(k_x, (B, num_inputs), jnp.float32)
    means, log_stds = gaussian_mixture_forward(x, w_fused, b_fused)
    jax.block_until_ready((means, log_stds))
    ref_m = x @ w_means + b_means
    ref_l = x @ w_log_stds + b_log_stds
    assert means.shape == (B, num_mixture) and log_stds.shape == (B, num_mixture)
    assert jnp.allclose(means, ref_m, atol=1e-4, rtol=1e-4)
    assert jnp.allclose(log_stds, ref_l, atol=1e-4, rtol=1e-4)

    # --- 2. Large batch: Pallas path, matched bf16 I/O, f32 accumulation. ---
    B2 = 4096
    x2 = jax.random.normal(k_x2, (B2, num_inputs), jnp.float32)
    m2, l2 = gaussian_mixture_forward(x2, w_fused, b_fused)
    jax.block_until_ready((m2, l2))
    x2b = x2.astype(jnp.bfloat16).astype(jnp.float32)
    wmb = w_means.astype(jnp.bfloat16).astype(jnp.float32)
    wlb = w_log_stds.astype(jnp.bfloat16).astype(jnp.float32)
    assert m2.shape == (B2, num_mixture) and l2.shape == (B2, num_mixture)
    assert jnp.allclose(m2, x2b @ wmb + b_means, atol=5e-3, rtol=5e-3)
    assert jnp.allclose(l2, x2b @ wlb + b_log_stds, atol=5e-3, rtol=5e-3)

    # --- 3. Non-tile-multiple batch, explicit tile, f32 I/O: exercises the
    #        multi-step grid + zero-padding path with tight tolerance. ---
    B3 = 4099
    x3 = jax.random.normal(k_x2, (B3, num_inputs), jnp.float32)
    m3, l3 = gaussian_mixture_forward(
        x3, w_fused, b_fused, tb=1024, use_bf16=False
    )
    jax.block_until_ready((m3, l3))
    assert m3.shape == (B3, num_mixture) and l3.shape == (B3, num_mixture)
    assert jnp.allclose(m3, x3 @ w_means + b_means, atol=1e-4, rtol=1e-4)
    assert jnp.allclose(l3, x3 @ w_log_stds + b_log_stds, atol=1e-4, rtol=1e-4)

    # TODO(synk): mixture()/log_gaussian()/kl_divergence use torch RNG / loss
    # semantics and are not part of forward(); only forward() is implemented.

    print("KERNEL_OK")
</pallas_src>

<mosaic_0001>
module attributes {stable_mosaic.version = 11 : i64} {
  func.func @_gmm_fused_kernel(%arg0: i32, %arg1: memref<2048x32xbf16, #tpu.memory_space<vmem>>, %arg2: memref<32x32xbf16, #tpu.memory_space<vmem>>, %arg3: memref<1x32xf32, #tpu.memory_space<vmem>>, %arg4: memref<2048x32xf32, #tpu.memory_space<vmem>>) attributes {dimension_semantics = [#tpu.dimension_semantics<parallel>], iteration_bounds = array<i64: 2>, scalar_prefetch = 0 : i64, scratch_operands = 0 : i64, tpu.core_type = #tpu.core_type<tc>, window_params = [{transform_indices = @transform_0, window_bounds = array<i64: 2048, 32>}, {pipeline_mode = #tpu.pipeline_mode<synchronous>, transform_indices = @transform_1, window_bounds = array<i64: 32, 32>}, {pipeline_mode = #tpu.pipeline_mode<synchronous>, transform_indices = @transform_2, window_bounds = array<i64: 1, 32>}, {transform_indices = @transform_3, window_bounds = array<i64: 2048, 32>}]} {
    %c0 = arith.constant 0 : index
    %c0_0 = arith.constant 0 : index
    %0 = vector.load %arg1[%c0, %c0_0] : memref<2048x32xbf16, #tpu.memory_space<vmem>>, vector<2048x32xbf16>
    %c0_1 = arith.constant 0 : index
    %c0_2 = arith.constant 0 : index
    %1 = vector.load %arg2[%c0_1, %c0_2] : memref<32x32xbf16, #tpu.memory_space<vmem>>, vector<32x32xbf16>
    %cst = arith.constant dense<0.000000e+00> : vector<2048x32xf32>
    %2 = tpu.matmul %0, %1, %cst {dimension_numbers = #tpu.dot_dimension_numbers<[1], [0], [0], [1], [0, 0, 1, 1], [], []>} : vector<2048x32xbf16>, vector<32x32xbf16>, vector<2048x32xf32> -> vector<2048x32xf32>
    %c0_3 = arith.constant 0 : index
    %c0_4 = arith.constant 0 : index
    %3 = vector.load %arg3[%c0_3, %c0_4] : memref<1x32xf32, #tpu.memory_space<vmem>>, vector<1x32xf32>
    %4 = vector.broadcast %3 : vector<1x32xf32> to vector<2048x32xf32>
    %5 = arith.addf %2, %4 : vector<2048x32xf32>
    %c0_5 = arith.constant 0 : index
    %c0_6 = arith.constant 0 : index
    %6 = vector.load %arg4[%c0_5, %c0_6] : memref<2048x32xf32, #tpu.memory_space<vmem>>, vector<2048x32xf32>
    tpu.vector_store %arg4[%c0_5, %c0_6], %5 {strides = array<i32>} : memref<2048x32xf32, #tpu.memory_space<vmem>>, vector<2048x32xf32>,
    return
  }
  func.func @transform_0(%arg0: i32) -> (i32, i32) {
    %c0_i32 = arith.constant 0 : i32
    %c0_i32_0 = arith.constant 0 : i32
    return %arg0, %c0_i32 : i32, i32
  }
  func.func @transform_1(%arg0: i32) -> (i32, i32) {
    %c0_i32 = arith.constant 0 : i32
    %c0_i32_0 = arith.constant 0 : i32
    %c0_i32_1 = arith.constant 0 : i32
    return %c0_i32, %c0_i32_0 : i32, i32
  }
  func.func @transform_2(%arg0: i32) -> (i32, i32) {
    %c0_i32 = arith.constant 0 : i32
    %c0_i32_0 = arith.constant 0 : i32
    %c0_i32_1 = arith.constant 0 : i32
    return %c0_i32, %c0_i32_0 : i32, i32
  }
  func.func @transform_3(%arg0: i32) -> (i32, i32) {
    %c0_i32 = arith.constant 0 : i32
    %c0_i32_0 = arith.constant 0 : i32
    return %arg0, %c0_i32 : i32, i32
  }
}

</mosaic_0001>

<bundles_post_ra>
// kernel: tpu_custom_call.1
= control target key start
LH: loop header
LB: loop body
LE: loop exit
PB: predicated region body
PF: predicated region fallthrough
CT: control target
= control target key end

     0   :  { %8 = vsyncpa [#allocation3], 0  ;;  %s4957_s0 = inlined_call_operand.vmem [shape: bf16[4096,32], index: 0, kind: input, shape index: {}]   ;;  %s4958_s1 = inlined_call_operand.hbm [shape: bf16[32,32], index: 1, kind: input, shape index: {}]   ;;  %s4959_s2 = inlined_call_operand.hbm [shape: f32[1,32], index: 2, kind: input, shape index: {}]   ;;  %s4960_s3 = inlined_call_operand.vmem [shape: f32[4096,32], index: 3, kind: output, shape index: {}]  }
   0x1   :  { %9 = vsyncpa [#allocation5], 0  ;;  %s3824_s12 = smov 0  }
   0x2 LB: > { %s2898_s13 = sadd.s32 4294967295, %s3798_s12   ;;  %p2900_p0 = scmp.ge.s32.totalorder %s3798_s12, 1  ;;  %s3798_s12 = sphi %s3824_s12, %s15_s12  }
   0x3   : > { %p114_p1 = scmp.lt.s32.totalorder %s3798_s12, 3  ;;  %s3800_s14 = smov [#allocation2]  }
   0x4   : > { %s126_s15 = sshll.u32 %s3800_s14, 4  ;;  %p3838_p3 = scmp.eq.s32.totalorder %s2898_s13, 0  ;;  %s127_s15 = int_to_ptr.vmem [resolvable:$true] %s126_s15 }
   0x5   : > { %p3832_p2 = pnand %p2900_p0, %p114_p1  ;;  %s3801_s18 = smov [#allocation4]  }
   0x6   : > { %s4965_s17 = scalar_select %p3838_p3, 1, 0 }
   0x7   : > { %s4964_s16 = scalar_select %p3832_p2, 1, 0 }
   0x8   : > { %p3574_p4 = pneg %p3832_p2  ;;  %s140_s19 = sshll.u32 %s3801_s18, 4  ;;  %s3850_s19 = int_to_ptr.vmem [resolvable:$true] %s140_s19 }
   0x9   : > { %s3728_s23 = scalar_lea.hbm %s4958_s1, 256 }
   0xa   : > { %p3846_p5 = pnand %p3838_p3, %p3574_p4  ;;  %p3729_p6 = scmp.ne.s32.totalorder %s4958_s1, %s3728_s23 }
   0xb   : > { %p3735_p10 = scmp.lt.u32.totalorder %s3728_s23, %s4958_s1 }
   0xc   : > { %p3730_p7 = pneg %p3846_p5 }
   0xe   : > { %p3731_p8 = pnand %p3730_p7, %p3729_p6 }
  0x10   : > { %p3732_p9 = pneg %p3731_p8 }
  0x12   : > { %p3737_p11 = pnand %p3735_p10, %p3732_p9 }
  0x14   : > { %3740 = shalt.err (!%p3737_p11)
}
  0x15   : > { %s3741_s28 = scalar_lea.vmem %s127_s15, 256  ;;  %p3749_p1 = scmp.lt.s32.totalorder %s127_s15, %s127_s15 }
  0x16   : > { %p3742_p12 = scmp.ne.s32.totalorder %s127_s15, %s3741_s28  ;;  %p3750_p4 = scmp.lt.s32.totalorder %s3741_s28, %s3741_s28 }
  0x18   : > { %p3744_p13 = pnand %p3742_p12, %p3730_p7  ;;  %p3751_p3 = por %p3750_p4, %p3749_p1 }
  0x1a   : > { %p3745_p0 = pneg %p3744_p13 }
  0x1c   : > { %p3752_p2 = pnand %p3751_p3, %p3745_p0 }
  0x1e   : > { %3755 = shalt.err (!%p3752_p2)
}
  0x1f   : > { %s3802_s29 = smov 64   ;;  %s3803_s30 = smov 4  }
  0x20   : > { %3577 = dma.hbm_to_vmem [thread:$0]  (!%p3846_p5), %s4958_s1, 256, %s127_s15, [#allocation3], %s3802_s29, %s3802_s29, %s3803_s30  }
  0x21   : > { %s3756_s8 = scalar_lea.hbm %s4959_s2, 16 }
  0x22   : > { %p3757_p6 = scmp.ne.s32.totalorder %s4959_s2, %s3756_s8  ;;  %p3763_p8 = scmp.lt.u32.totalorder %s3756_s8, %s4959_s2 }
  0x24   : > { %p3759_p2 = pnand %p3757_p6, %p3730_p7 }
  0x26   : > { %p3760_p3 = pneg %p3759_p2 }
  0x28   : > { %p3765_p9 = pnand %p3763_p8, %p3760_p3 }
  0x2a   : > { %3768 = shalt.err (!%p3765_p9)
}
  0x2b   : > { %s3769_s15 = scalar_lea.vmem %s3850_s19, 16  ;;  %s3776_s18 = scalar_lea.vmem %s3850_s19, 32 }
  0x2c   : > { %p3770_p10 = scmp.ne.s32.totalorder %s3850_s19, %s3769_s15  ;;  %p3777_p13 = scmp.lt.s32.totalorder %s3850_s19, %s3850_s19 }
  0x2d   : > { %p3778_p0 = scmp.lt.s32.totalorder %s3776_s18, %s3769_s15 }
  0x2e   : > { %p3772_p11 = pnand %p3770_p10, %p3730_p7 }
  0x2f   : > { %p3779_p1 = por %p3778_p0, %p3777_p13 }
  0x30   : > { %p3773_p12 = pneg %p3772_p11 }
  0x32   : > { %p3780_p4 = pnand %p3779_p1, %p3773_p12 }
  0x34   : > { %3783 = shalt.err (!%p3780_p4)
}
  0x35   : > { %3580 = dma.hbm_to_vmem [thread:$0]  (!%p3846_p5), %s4959_s2, 16, %s3850_s19, [#allocation5]  }
  0x36   : > { %p4967_p6 = scmp.ne.s32.totalorder %s4964_s16, 0 }
  0x37   : > { %p4968_p7 = scmp.ne.s32.totalorder (!%p4967_p6), %s4965_s17, 0 }
  0x38   : > { %162 = sbr.rel (%p4967_p6) target bundleno = 541 (0x21d), region = 32 }
  0x3f   : > { %3789 = dma.done.wait (%p4968_p7), [#allocation3], 256  }
  0x40   : > { %3791 = vsyncadd (%p4968_p7), [#allocation3], 4294967040 }
  0x41   : > { %3793 = dma.done.wait (%p4968_p7), [#allocation5], 16  }
  0x42   : > { %3795 = vsyncadd (%p4968_p7), [#allocation5], 4294967280  ;;  %s2907_s20 = sshll.u32 %s2898_s13, 8  ;;  %v3597_v0 = vld [vmem:[#allocation2] sm:$0xff]   ;;  %v3598_v1 = vld [vmem:[#allocation2 + $0x8] sm:$0xff]   ;;  %vm1122_vm0 = vcmask 261120  }
  0x43   : > { %p191_p2 = scmp.lt.s32.totalorder %s2907_s20, 511  ;;  %3302 = vmatprep.subr.bf16.mxu0 %v3597_v0  ;;  %3562 = vmatprep.subr.bf16.mxu1 %v3597_v0 }
  0x44   : > { %3303 = vmatpush3.bf16.msra.mxu0 %v3597_v0  ;;  %3564 = vmatpush3.bf16.msra.mxu1 %v3597_v0 }
  0x45   : > { %s4970_s20 = smov (!%p191_p2, %s2907_s20), 511  ;;  %3304 = vmatprep.subr.bf16.mxu0 %v3598_v1  ;;  %3563 = vmatprep.subr.bf16.mxu1 %v3598_v1 }
  0x46   : > { %s2908_s16 = sshll.u32 %s4970_s20, 2  ;;  %s2910_s13 = sshll.u32 %s4970_s20, 3 }
  0x47   : > { %s3918_s24 = scalar_lea.vmem %s4957_s0, %s2908_s16  ;;  %s4146_s26 = scalar_lea.vmem %s4960_s3, %s2910_s13 }
  0x48   : > { %v3599_v2 = vld [vmem:[%s3918_s24] sm:$0xff]   ;;  %v3601_v4 = vld [vmem:[%s3918_s24 + $0x8] sm:$0xff]   ;;  %v3603_v6 = vld [vmem:[%s3918_s24 + $0x10] sm:$0xff]   ;;  %3305 = vmatpush3.bf16.msra.mxu0 %v3598_v1  ;;  %3565 = vmatpush3.bf16.msra.mxu1 %v3598_v1 }
  0x49   : > { %v3600_v3 = vld [vmem:[%s3918_s24 + $0x200] sm:$0xff]   ;;  %3306 = vmatprep.mubr.msk.bf16.mxu0 %vm1122_vm0, %v3599_v2  ;;  %v3602_v5 = vld [vmem:[%s3918_s24 + $0x208] sm:$0xff]   ;;  %v3604_v7 = vld [vmem:[%s3918_s24 + $0x210] sm:$0xff]  }
  0x4a   : > { %3434 = vmatprep.mubr.msk.bf16.mxu1 %vm1122_vm0, %v3600_v3  ;;  %v3605_v8 = vld [vmem:[%s3918_s24 + $0x18] sm:$0xff]   ;;  %v3607_v10 = vld [vmem:[%s3918_s24 + $0x20] sm:$0xff]   ;;  %v3609_v12 = vld [vmem:[%s3918_s24 + $0x28] sm:$0xff]  }
  0x4b   : > { %3307 = vmatmul.mubr.msk.bf16.vlgmr.msra.gmra.mrb[0].mxu0 %vm1122_vm0, %v3601_v4  ;;  %3435 = vmatmul.mubr.msk.bf16.vlgmr.msra.gmra.mrb[0].mxu1 %vm1122_vm0, %v3602_v5  ;;  %v3606_v9 = vld [vmem:[%s3918_s24 + $0x218] sm:$0xff]   ;;  %v3608_v11 = vld [vmem:[%s3918_s24 + $0x220] sm:$0xff]   ;;  %v3610_v13 = vld [vmem:[%s3918_s24 + $0x228] sm:$0xff]  }
  0x4c   : > { %3310 = vmatprep.mubr.msk.bf16.mxu0 %vm1122_vm0, %v3603_v6  ;;  %3438 = vmatprep.mubr.msk.bf16.mxu1 %vm1122_vm0, %v3604_v7  ;;  %v3611_v14 = vld [vmem:[%s3918_s24 + $0x30] sm:$0xff]   ;;  %v3613_v16 = vld [vmem:[%s3918_s24 + $0x38] sm:$0xff]   ;;  %v3615_v18 = vld [vmem:[%s3918_s24 + $0x40] sm:$0xff]  }
  0x4d   : > { %v3612_v15 = vld [vmem:[%s3918_s24 + $0x230] sm:$0xff]   ;;  %v3614_v17 = vld [vmem:[%s3918_s24 + $0x238] sm:$0xff]   ;;  %v3616_v19 = vld [vmem:[%s3918_s24 + $0x240] sm:$0xff]  }
  0x4e   : > { %v3617_v20 = vld [vmem:[%s3918_s24 + $0x48] sm:$0xff]   ;;  %v3619_v22 = vld [vmem:[%s3918_s24 + $0x50] sm:$0xff]   ;;  %v3621_v24 = vld [vmem:[%s3918_s24 + $0x58] sm:$0xff]  }
  0x4f   : > { %v3618_v21 = vld [vmem:[%s3918_s24 + $0x248] sm:$0xff]   ;;  %v3620_v23 = vld [vmem:[%s3918_s24 + $0x250] sm:$0xff]   ;;  %v3622_v25 = vld [vmem:[%s3918_s24 + $0x258] sm:$0xff]  }
  0x50   : > { %v3623_v26 = vld [vmem:[%s3918_s24 + $0x60] sm:$0xff]   ;;  %v3625_v28 = vld [vmem:[%s3918_s24 + $0x68] sm:$0xff]   ;;  %v3627_v30 = vld [vmem:[%s3918_s24 + $0x70] sm:$0xff]  }
  0x51   : > { %v3624_v27 = vld [vmem:[%s3918_s24 + $0x260] sm:$0xff]   ;;  %v3626_v29 = vld [vmem:[%s3918_s24 + $0x268] sm:$0xff]   ;;  %v3628_v31 = vld [vmem:[%s3918_s24 + $0x270] sm:$0xff]  }
  0x52   : > { %v3629_v32 = vld [vmem:[%s3918_s24 + $0x78] sm:$0xff]   ;;  %v3631_v34 = vld [vmem:[%s3918_s24 + $0x80] sm:$0xff]   ;;  %v3633_v36 = vld [vmem:[%s3918_s24 + $0x88] sm:$0xff]  }
  0x53   : > { %3311 = vmatmul.mubr.msk.bf16.gmra.mrb[4].mxu0 %vm1122_vm0, %v3605_v8  ;;  %3439 = vmatmul.mubr.msk.bf16.gmra.mrb[4].mxu1 %vm1122_vm0, %v3606_v9  ;;  %v3630_v33 = vld [vmem:[%s3918_s24 + $0x278] sm:$0xff]   ;;  %v3632_v35 = vld [vmem:[%s3918_s24 + $0x280] sm:$0xff]   ;;  %v3634_v37 = vld [vmem:[%s3918_s24 + $0x288] sm:$0xff]  }
  0x54   : > { %3314 = vmatprep.mubr.msk.bf16.mxu0 %vm1122_vm0, %v3607_v10  ;;  %3442 = vmatprep.mubr.msk.bf16.mxu1 %vm1122_vm0, %v3608_v11  ;;  %v3635_v38 = vld [vmem:[%s3918_s24 + $0x90] sm:$0xff]   ;;  %v3637_v40 = vld [vmem:[%s3918_s24 + $0x98] sm:$0xff]   ;;  %v3639_v42 = vld [vmem:[%s3918_s24 + $0xa0] sm:$0xff]  }
  0x55   : > { %v3636_v39 = vld [vmem:[%s3918_s24 + $0x290] sm:$0xff]   ;;  %v3638_v41 = vld [vmem:[%s3918_s24 + $0x298] sm:$0xff]   ;;  %v3640_v43 = vld [vmem:[%s3918_s24 + $0x2a0] sm:$0xff]  }
  0x56   : > { %v3641_v44 = vld [vmem:[%s3918_s24 + $0xa8] sm:$0xff]   ;;  %v3643_v46 = vld [vmem:[%s3918_s24 + $0xb0] sm:$0xff]   ;;  %v3645_v48 = vld [vmem:[%s3918_s24 + $0xb8] sm:$0xff]  }
  0x57   : > { %v3642_v45 = vld [vmem:[%s3918_s24 + $0x2a8] sm:$0xff]   ;;  %v3644_v47 = vld [vmem:[%s3918_s24 + $0x2b0] sm:$0xff]   ;;  %v3646_v49 = vld [vmem:[%s3918_s24 + $0x2b8] sm:$0xff]  }
  0x58   : > { %v3647_v50 = vld [vmem:[%s3918_s24 + $0xc0] sm:$0xff]   ;;  %v3649_v52 = vld [vmem:[%s3918_s24 + $0xc8] sm:$0xff]   ;;  %v3651_v54 = vld [vmem:[%s3918_s24 + $0xd0] sm:$0xff]  }
  0x59   : > { %v3648_v51 = vld [vmem:[%s3918_s24 + $0x2c0] sm:$0xff]   ;;  %v3650_v53 = vld [vmem:[%s3918_s24 + $0x2c8] sm:$0xff]   ;;  %v3652_v55 = vld [vmem:[%s3918_s24 + $0x2d0] sm:$0xff]  }
  0x5a   : > { %v3653_v56 = vld [vmem:[%s3918_s24 + $0xd8] sm:$0xff]   ;;  %v3655_v58 = vld [vmem:[%s3918_s24 + $0xe0] sm:$0xff]   ;;  %v3657_v60 = vld [vmem:[%s3918_s24 + $0xe8] sm:$0xff]  }
  0x5b   : > { %3315 = vmatmul.mubr.msk.bf16.gmra.mrb[8].mxu0 %vm1122_vm0, %v3609_v12  ;;  %3443 = vmatmul.mubr.msk.bf16.gmra.mrb[8].mxu1 %vm1122_vm0, %v3610_v13  ;;  %v3654_v57 = vld [vmem:[%s3918_s24 + $0x2d8] sm:$0xff]   ;;  %v3656_v59 = vld [vmem:[%s3918_s24 + $0x2e0] sm:$0xff]   ;;  %v3658_v61 = vld [vmem:[%s3918_s24 + $0x2e8] sm:$0xff]  }
  0x5c   : > { %3318 = vmatprep.mubr.msk.bf16.mxu0 %vm1122_vm0, %v3611_v14  ;;  %3446 = vmatprep.mubr.msk.bf16.mxu1 %vm1122_vm0, %v3612_v15  ;;  %v3659_v62 = vld [vmem:[%s3918_s24 + $0xf0] sm:$0xff]   ;;  %v3661_v0 = vld [vmem:[%s3918_s24 + $0xf8] sm:$0xff]   ;;  %v3663_v2 = vld [vmem:[%s3918_s24 + $0x100] sm:$0xff]  }
  0x5d   : > { %v3660_v63 = vld [vmem:[%s3918_s24 + $0x2f0] sm:$0xff]   ;;  %v3662_v1 = vld [vmem:[%s3918_s24 + $0x2f8] sm:$0xff]   ;;  %v3664_v3 = vld [vmem:[%s3918_s24 + $0x300] sm:$0xff]  }
  0x5e   : > { %v3665_v4 = vld [vmem:[%s3918_s24 + $0x108] sm:$0xff]   ;;  %v3667_v6 = vld [vmem:[%s3918_s24 + $0x110] sm:$0xff]   ;;  %v3669_v8 = vld [vmem:[%s3918_s24 + $0x118] sm:$0xff]  }
  0x5f   : > { %v3666_v5 = vld [vmem:[%s3918_s24 + $0x308] sm:$0xff]   ;;  %v3668_v7 = vld [vmem:[%s3918_s24 + $0x310] sm:$0xff]   ;;  %v3670_v9 = vld [vmem:[%s3918_s24 + $0x318] sm:$0xff]  }
  0x60   : > { %v3671_v10 = vld [vmem:[%s3918_s24 + $0x120] sm:$0xff]   ;;  %v3673_v12 = vld [vmem:[%s3918_s24 + $0x128] sm:$0xff]   ;;  %v3675_v14 = vld [vmem:[%s3918_s24 + $0x130] sm:$0xff]  }
  0x61   : > { %v3672_v11 = vld [vmem:[%s3918_s24 + $0x320] sm:$0xff]   ;;  %v3674_v13 = vld [vmem:[%s3918_s24 + $0x328] sm:$0xff]   ;;  %v3676_v15 = vld [vmem:[%s3918_s24 + $0x330] sm:$0xff]  }
  0x63   : > { %3319 = vmatmul.mubr.msk.bf16.gmra.mrb[12].mxu0 %vm1122_vm0, %v3613_v16  ;;  %3447 = vmatmul.mubr.msk.bf16.gmra.mrb[12].mxu1 %vm1122_vm0, %v3614_v17  ;;  %v3677_v16 = vld [vmem:[%s3918_s24 + $0x138] sm:$0xff]  }
  0x64   : > { %3322 = vmatprep.mubr.msk.bf16.mxu0 %vm1122_vm0, %v3615_v18  ;;  %3450 = vmatprep.mubr.msk.bf16.mxu1 %vm1122_vm0, %v3616_v19  ;;  %v3678_v17 = vld [vmem:[%s3918_s24 + $0x338] sm:$0xff]   ;;  %v3679_v18 = vld [vmem:[%s3918_s24 + $0x140] sm:$0xff]  }
  0x65   : > { %v3680_v19 = vld [vmem:[%s3918_s24 + $0x340] sm:$0xff]  }
  0x6b   : > { %3323 = vmatmul.mubr.msk.bf16.gmra.mrb[16].mxu0 %vm1122_vm0, %v3617_v20  ;;  %3451 = vmatmul.mubr.msk.bf16.gmra.mrb[16].mxu1 %vm1122_vm0, %v3618_v21  ;;  %v3681_v20 = vld [vmem:[%s3918_s24 + $0x148] sm:$0xff]  }
  0x6c   : > { %3326 = vmatprep.mubr.msk.bf16.mxu0 %vm1122_vm0, %v3619_v22  ;;  %3454 = vmatprep.mubr.msk.bf16.mxu1 %vm1122_vm0, %v3620_v23  ;;  %v3682_v21 = vld [vmem:[%s3918_s24 + $0x348] sm:$0xff]   ;;  %v3683_v22 = vld [vmem:[%s3918_s24 + $0x150] sm:$0xff]  }
  0x6d   : > { %v3684_v23 = vld [vmem:[%s3918_s24 + $0x350] sm:$0xff]  }
  0x73   : > { %3327 = vmatmul.mubr.msk.bf16.gmra.mrb[20].mxu0 %vm1122_vm0, %v3621_v24  ;;  %3455 = vmatmul.mubr.msk.bf16.gmra.mrb[20].mxu1 %vm1122_vm0, %v3622_v25  ;;  %v3685_v24 = vld [vmem:[%s3918_s24 + $0x158] sm:$0xff]  }
  0x74   : > { %3330 = vmatprep.mubr.msk.bf16.mxu0 %vm1122_vm0, %v3623_v26  ;;  %3458 = vmatprep.mubr.msk.bf16.mxu1 %vm1122_vm0, %v3624_v27  ;;  %v3686_v25 = vld [vmem:[%s3918_s24 + $0x358] sm:$0xff]   ;;  %v3687_v26 = vld [vmem:[%s3918_s24 + $0x160] sm:$0xff]  }
  0x75   : > { %v3688_v27 = vld [vmem:[%s3918_s24 + $0x360] sm:$0xff]  }
  0x7b   : > { %3331 = vmatmul.mubr.msk.bf16.gmra.mrb[24].mxu0 %vm1122_vm0, %v3625_v28  ;;  %3459 = vmatmul.mubr.msk.bf16.gmra.mrb[24].mxu1 %vm1122_vm0, %v3626_v29  ;;  %v3689_v28 = vld [vmem:[%s3918_s24 + $0x168] sm:$0xff]  }
  0x7c   : > { %3334 = vmatprep.mubr.msk.bf16.mxu0 %vm1122_vm0, %v3627_v30  ;;  %3462 = vmatprep.mubr.msk.bf16.mxu1 %vm1122_vm0, %v3628_v31  ;;  %v3690_v29 = vld [vmem:[%s3918_s24 + $0x368] sm:$0xff]   ;;  %v3691_v30 = vld [vmem:[%s3918_s24 + $0x170] sm:$0xff]  }
  0x7d   : > { %v3692_v31 = vld [vmem:[%s3918_s24 + $0x370] sm:$0xff]  }
  0x83   : > { %3335 = vmatmul.mubr.msk.bf16.gmra.mrb[28].mxu0 %vm1122_vm0, %v3629_v32  ;;  %3463 = vmatmul.mubr.msk.bf16.gmra.mrb[28].mxu1 %vm1122_vm0, %v3630_v33  ;;  %v3693_v32 = vld [vmem:[%s3918_s24 + $0x178] sm:$0xff]  }
  0x84   : > { %3338 = vmatprep.mubr.msk.bf16.mxu0 %vm1122_vm0, %v3631_v34  ;;  %3466 = vmatprep.mubr.msk.bf16.mxu1 %vm1122_vm0, %v3632_v35  ;;  %v3694_v33 = vld [vmem:[%s3918_s24 + $0x378] sm:$0xff]   ;;  %v3695_v34 = vld [vmem:[%s3918_s24 + $0x180] sm:$0xff]  }
  0x85   : > { %v3696_v35 = vld [vmem:[%s3918_s24 + $0x380] sm:$0xff]  }
  0x8b   : > { %3339 = vmatmul.mubr.msk.bf16.gmra.mrb[32].mxu0 %vm1122_vm0, %v3633_v36  ;;  %3467 = vmatmul.mubr.msk.bf16.gmra.mrb[32].mxu1 %vm1122_vm0, %v3634_v37  ;;  %v3697_v36 = vld [vmem:[%s3918_s24 + $0x188] sm:$0xff]  }
  0x8c   : > { %3342 = vmatprep.mubr.msk.bf16.mxu0 %vm1122_vm0, %v3635_v38  ;;  %3470 = vmatprep.mubr.msk.bf16.mxu1 %vm1122_vm0, %v3636_v39  ;;  %v3698_v37 = vld [vmem:[%s3918_s24 + $0x388] sm:$0xff]   ;;  %v3699_v38 = vld [vmem:[%s3918_s24 + $0x190] sm:$0xff]  }
  0x8d   : > { %v3700_v39 = vld [vmem:[%s3918_s24 + $0x390] sm:$0xff]  }
  0x93   : > { %3343 = vmatmul.mubr.msk.bf16.gmra.mrb[36].mxu0 %vm1122_vm0, %v3637_v40  ;;  %3471 = vmatmul.mubr.msk.bf16.gmra.mrb[36].mxu1 %vm1122_vm0, %v3638_v41  ;;  %v3701_v40 = vld [vmem:[%s3918_s24 + $0x198] sm:$0xff]  }
  0x94   : > { %3346 = vmatprep.mubr.msk.bf16.mxu0 %vm1122_vm0, %v3639_v42  ;;  %3474 = vmatprep.mubr.msk.bf16.mxu1 %vm1122_vm0, %v3640_v43  ;;  %v3702_v41 = vld [vmem:[%s3918_s24 + $0x398] sm:$0xff]   ;;  %v3703_v42 = vld [vmem:[%s3918_s24 + $0x1a0] sm:$0xff]  }
  0x95   : > { %v3704_v43 = vld [vmem:[%s3918_s24 + $0x3a0] sm:$0xff]  }
  0x9b   : > { %3347 = vmatmul.mubr.msk.bf16.gmra.mrb[40].mxu0 %vm1122_vm0, %v3641_v44  ;;  %3475 = vmatmul.mubr.msk.bf16.gmra.mrb[40].mxu1 %vm1122_vm0, %v3642_v45  ;;  %v3705_v44 = vld [vmem:[%s3918_s24 + $0x1a8] sm:$0xff]  }
  0x9c   : > { %3350 = vmatprep.mubr.msk.bf16.mxu0 %vm1122_vm0, %v3643_v46  ;;  %3478 = vmatprep.mubr.msk.bf16.mxu1 %vm1122_vm0, %v3644_v47  ;;  %v3706_v45 = vld [vmem:[%s3918_s24 + $0x3a8] sm:$0xff]   ;;  %v3707_v46 = vld [vmem:[%s3918_s24 + $0x1b0] sm:$0xff]  }
  0x9d   : > { %v3708_v47 = vld [vmem:[%s3918_s24 + $0x3b0] sm:$0xff]  }
  0xa3   : > { %3351 = vmatmul.mubr.msk.bf16.gmra.mrb[44].mxu0 %vm1122_vm0, %v3645_v48  ;;  %3479 = vmatmul.mubr.msk.bf16.gmra.mrb[44].mxu1 %vm1122_vm0, %v3646_v49  ;;  %v4139_v48 = vld [vmem:[#allocation4] ss:$0 sm:$0xff] }
  0xa4   : > { %3354 = vmatprep.mubr.msk.bf16.mxu0 %vm1122_vm0, %v3647_v50  ;;  %3482 = vmatprep.mubr.msk.bf16.mxu1 %vm1122_vm0, %v3648_v51 }
  0xab   : > { %3355 = vmatmul.mubr.msk.bf16.gmra.mrb[48].mxu0 %vm1122_vm0, %v3649_v52  ;;  %3483 = vmatmul.mubr.msk.bf16.gmra.mrb[48].mxu1 %vm1122_vm0, %v3650_v53 }
  0xac   : > { %3358 = vmatprep.mubr.msk.bf16.mxu0 %vm1122_vm0, %v3651_v54  ;;  %3486 = vmatprep.mubr.msk.bf16.mxu1 %vm1122_vm0, %v3652_v55  ;;  %v3709_v55 = vld [vmem:[%s3918_s24 + $0x1b8] sm:$0xff]  }
  0xb3   : > { %3359 = vmatmul.mubr.msk.bf16.gmra.mrb[52].mxu0 %vm1122_vm0, %v3653_v56  ;;  %3487 = vmatmul.mubr.msk.bf16.gmra.mrb[52].mxu1 %vm1122_vm0, %v3654_v57  ;;  %v3710_v56 = vld [vmem:[%s3918_s24 + $0x3b8] sm:$0xff]  }
  0xb4   : > { %3362 = vmatprep.mubr.msk.bf16.mxu0 %vm1122_vm0, %v3655_v58  ;;  %3490 = vmatprep.mubr.msk.bf16.mxu1 %vm1122_vm0, %v3656_v59 }
  0xbb   : > { %3363 = vmatmul.mubr.msk.bf16.gmra.mrb[56].mxu0 %vm1122_vm0, %v3657_v60  ;;  %3491 = vmatmul.mubr.msk.bf16.gmra.mrb[56].mxu1 %vm1122_vm0, %v3658_v61  ;;  %v3711_v61 = vld [vmem:[%s3918_s24 + $0x1c0] sm:$0xff]  }
  0xbc   : > { %3366 = vmatprep.mubr.msk.bf16.mxu0 %vm1122_vm0, %v3659_v62  ;;  %3494 = vmatprep.mubr.msk.bf16.mxu1 %vm1122_vm0, %v3660_v63  ;;  %v3712_v62 = vld [vmem:[%s3918_s24 + $0x3c0] sm:$0xff]  }
  0xc3   : > { %3367 = vmatmul.mubr.msk.bf16.gmra.mrb[60].mxu0 %vm1122_vm0, %v3661_v0  ;;  %3495 = vmatmul.mubr.msk.bf16.gmra.mrb[60].mxu1 %vm1122_vm0, %v3662_v1 }
  0xc4   : > { %3370 = vmatprep.mubr.msk.bf16.mxu0 %vm1122_vm0, %v3663_v2  ;;  %3498 = vmatprep.mubr.msk.bf16.mxu1 %vm1122_vm0, %v3664_v3 }
  0xcb   : > { %3371 = vmatmul.mubr.msk.bf16.gmra.mrb[64].mxu0 %vm1122_vm0, %v3665_v4  ;;  %3499 = vmatmul.mubr.msk.bf16.gmra.mrb[64].mxu1 %vm1122_vm0, %v3666_v5 }
  0xcc   : > { %3374 = vmatprep.mubr.msk.bf16.mxu0 %vm1122_vm0, %v3667_v6  ;;  %3502 = vmatprep.mubr.msk.bf16.mxu1 %vm1122_vm0, %v3668_v7 }
  0xd3   : > { %3375 = vmatmul.mubr.msk.bf16.gmra.mrb[68].mxu0 %vm1122_vm0, %v3669_v8  ;;  %3503 = vmatmul.mubr.msk.bf16.gmra.mrb[68].mxu1 %vm1122_vm0, %v3670_v9 }
  0xd4   : > { %3378 = vmatprep.mubr.msk.bf16.mxu0 %vm1122_vm0, %v3671_v10  ;;  %3506 = vmatprep.mubr.msk.bf16.mxu1 %vm1122_vm0, %v3672_v11  ;;  %v3713_v11 = vld [vmem:[%s3918_s24 + $0x1c8] sm:$0xff]  }
  0xdb   : > { %3379 = vmatmul.mubr.msk.bf16.gmra.mrb[72].mxu0 %vm1122_vm0, %v3673_v12  ;;  %3507 = vmatmul.mubr.msk.bf16.gmra.mrb[72].mxu1 %vm1122_vm0, %v3674_v13  ;;  %v3714_v12 = vld [vmem:[%s3918_s24 + $0x3c8] sm:$0xff]  }
  0xdc   : > { %3382 = vmatprep.mubr.msk.bf16.mxu0 %vm1122_vm0, %v3675_v14  ;;  %3510 = vmatprep.mubr.msk.bf16.mxu1 %vm1122_vm0, %v3676_v15 }
  0xe3   : > { %3383 = vmatmul.mubr.msk.bf16.gmra.mrb[76].mxu0 %vm1122_vm0, %v3677_v16  ;;  %3511 = vmatmul.mubr.msk.bf16.gmra.mrb[76].mxu1 %vm1122_vm0, %v3678_v17  ;;  %v3715_v17 = vld [vmem:[%s3918_s24 + $0x1d0] sm:$0xff]  }
  0xe4   : > { %3386 = vmatprep.mubr.msk.bf16.mxu0 %vm1122_vm0, %v3679_v18  ;;  %3514 = vmatprep.mubr.msk.bf16.mxu1 %vm1122_vm0, %v3680_v19  ;;  %v3716_v18 = vld [vmem:[%s3918_s24 + $0x3d0] sm:$0xff]  }
  0xeb   : > { %3387 = vmatmul.mubr.msk.bf16.gmra.mrb[80].mxu0 %vm1122_vm0, %v3681_v20  ;;  %3515 = vmatmul.mubr.msk.bf16.gmra.mrb[80].mxu1 %vm1122_vm0, %v3682_v21 }
  0xec   : > { %3390 = vmatprep.mubr.msk.bf16.mxu0 %vm1122_vm0, %v3683_v22  ;;  %3518 = vmatprep.mubr.msk.bf16.mxu1 %vm1122_vm0, %v3684_v23 }
  0xf3   : > { %3391 = vmatmul.mubr.msk.bf16.gmra.mrb[84].mxu0 %vm1122_vm0, %v3685_v24  ;;  %3519 = vmatmul.mubr.msk.bf16.gmra.mrb[84].mxu1 %vm1122_vm0, %v3686_v25 }
  0xf4   : > { %3394 = vmatprep.mubr.msk.bf16.mxu0 %vm1122_vm0, %v3687_v26  ;;  %3522 = vmatprep.mubr.msk.bf16.mxu1 %vm1122_vm0, %v3688_v27 }
  0xfb   : > { %3395 = vmatmul.mubr.msk.bf16.gmra.mrb[88].mxu0 %vm1122_vm0, %v3689_v28  ;;  %3523 = vmatmul.mubr.msk.bf16.gmra.mrb[88].mxu1 %vm1122_vm0, %v3690_v29 }
  0xfc   : > { %3398 = vmatprep.mubr.msk.bf16.mxu0 %vm1122_vm0, %v3691_v30  ;;  %3526 = vmatprep.mubr.msk.bf16.mxu1 %vm1122_vm0, %v3692_v31  ;;  %v3717_v31 = vld [vmem:[%s3918_s24 + $0x1d8] sm:$0xff]  }
 0x103   : > { %3399 = vmatmul.mubr.msk.bf16.gmra.mrb[92].mxu0 %vm1122_vm0, %v3693_v32  ;;  %3527 = vmatmul.mubr.msk.bf16.gmra.mrb[92].mxu1 %vm1122_vm0, %v3694_v33  ;;  %v3718_v32 = vld [vmem:[%s3918_s24 + $0x3d8] sm:$0xff]  }
 0x104   : > { %3402 = vmatprep.mubr.msk.bf16.mxu0 %vm1122_vm0, %v3695_v34  ;;  %3530 = vmatprep.mubr.msk.bf16.mxu1 %vm1122_vm0, %v3696_v35 }
 0x10b   : > { %3403 = vmatmul.mubr.msk.bf16.gmra.mrb[96].mxu0 %vm1122_vm0, %v3697_v36  ;;  %3531 = vmatmul.mubr.msk.bf16.gmra.mrb[96].mxu1 %vm1122_vm0, %v3698_v37  ;;  %v3719_v37 = vld [vmem:[%s3918_s24 + $0x1e0] sm:$0xff]  }
 0x10c   : > { %3406 = vmatprep.mubr.msk.bf16.mxu0 %vm1122_vm0, %v3699_v38  ;;  %3534 = vmatprep.mubr.msk.bf16.mxu1 %vm1122_vm0, %v3700_v39  ;;  %v3720_v38 = vld [vmem:[%s3918_s24 + $0x3e0] sm:$0xff]  }
 0x113   : > { %3407 = vmatmul.mubr.msk.bf16.gmra.mrb[100].mxu0 %vm1122_vm0, %v3701_v40  ;;  %3535 = vmatmul.mubr.msk.bf16.gmra.mrb[100].mxu1 %vm1122_vm0, %v3702_v41 }
 0x114   : > { %3410 = vmatprep.mubr.msk.bf16.mxu0 %vm1122_vm0, %v3703_v42  ;;  %3538 = vmatprep.mubr.msk.bf16.mxu1 %vm1122_vm0, %v3704_v43 }
 0x11b   : > { %3411 = vmatmul.mubr.msk.bf16.gmra.mrb[104].mxu0 %vm1122_vm0, %v3705_v44  ;;  %3539 = vmatmul.mubr.msk.bf16.gmra.mrb[104].mxu1 %vm1122_vm0, %v3706_v45 }
 0x11c   : > { %3414 = vmatprep.mubr.msk.bf16.mxu0 %vm1122_vm0, %v3707_v46  ;;  %3542 = vmatprep.mubr.msk.bf16.mxu1 %vm1122_vm0, %v3708_v47 }
 0x11e   : > { %v3308_v49 = vpop.f32.mrb[0].mxu0  ;;  %v3436_v50 = vpop.f32.mrb[0].mxu1 }
 0x11f   : > { %v1550_v51 = vadd.f32 %v3308_v49, %v4139_v48  ;;  %v2062_v52 = vadd.f32 %v3436_v50, %v4139_v48  ;;  %v1541_v53 = vpop.f32.mrb[1].mxu0  ;;  %v2053_v54 = vpop.f32.mrb[1].mxu1 }
 0x120   : > { %v1542_v57 = vadd.f32 %v4139_v48, %v1541_v53  ;;  %v2054_v58 = vadd.f32 %v4139_v48, %v2053_v54  ;;  %v3309_v59 = vpop.f32.mrb[2].mxu0  ;;  %v3437_v60 = vpop.f32.mrb[2].mxu1  ;;  %v3722_v53 = vld [vmem:[%s3918_s24 + $0x3e8] sm:$0xff]  }
 0x121   : > { %2566 = vst.msk [vmem:[%s4146_s26 + $0x10] sm:$0xff] %vm1122_vm0, %v1550_v51  ;;  %2694 = vst.msk [vmem:[%s4146_s26 + $0x410] sm:$0xff] %vm1122_vm0, %v2062_v52  ;;  %v1553_v63 = vadd.f32 %v3309_v59, %v4139_v48  ;;  %v2065_v0 = vadd.f32 %v3437_v60, %v4139_v48  ;;  %v1544_v1 = vpop.f32.mrb[3].mxu0  ;;  %v2056_v2 = vpop.f32.mrb[3].mxu1  ;;  %v3721_v52 = vld [vmem:[%s3918_s24 + $0x1e8] sm:$0xff]   ;;  %v3724_v59 = vld [vmem:[%s3918_s24 + $0x3f0] sm:$0xff]  }
 0x122   : > { %2564 = vst.msk [vmem:[%s4146_s26] sm:$0xff] %vm1122_vm0, %v1542_v57  ;;  %2692 = vst.msk [vmem:[%s4146_s26 + $0x400] sm:$0xff] %vm1122_vm0, %v2054_v58  ;;  %v1545_v3 = vadd.f32 %v4139_v48, %v1544_v1  ;;  %v2057_v4 = vadd.f32 %v4139_v48, %v2056_v2  ;;  %v3723_v58 = vld [vmem:[%s3918_s24 + $0x1f0] sm:$0xff]  }
 0x123   : > { %2567 = vst.msk [vmem:[%s4146_s26 + $0x18] sm:$0xff] %vm1122_vm0, %v1553_v63  ;;  %2695 = vst.msk [vmem:[%s4146_s26 + $0x418] sm:$0xff] %vm1122_vm0, %v2065_v0  ;;  %3415 = vmatmul.mubr.msk.bf16.gmra.mrb[108].mxu0 %vm1122_vm0, %v3709_v55  ;;  %3543 = vmatmul.mubr.msk.bf16.gmra.mrb[108].mxu1 %vm1122_vm0, %v3710_v56 }
 0x124   : > { %2565 = vst.msk [vmem:[%s4146_s26 + $0x8] sm:$0xff] %vm1122_vm0, %v1545_v3  ;;  %2693 = vst.msk [vmem:[%s4146_s26 + $0x408] sm:$0xff] %vm1122_vm0, %v2057_v4  ;;  %3418 = vmatprep.mubr.msk.bf16.mxu0 %vm1122_vm0, %v3711_v61  ;;  %3546 = vmatprep.mubr.msk.bf16.mxu1 %vm1122_vm0, %v3712_v62 }
 0x126   : > { %v3312_v5 = vpop.f32.mrb[4].mxu0  ;;  %v3440_v6 = vpop.f32.mrb[4].mxu1 }
 0x127   : > { %v1566_v7 = vadd.f32 %v3312_v5, %v4139_v48  ;;  %v2078_v8 = vadd.f32 %v3440_v6, %v4139_v48  ;;  %v1557_v9 = vpop.f32.mrb[5].mxu0  ;;  %v2069_v10 = vpop.f32.mrb[5].mxu1 }
 0x128   : > { %v1558_v13 = vadd.f32 %v4139_v48, %v1557_v9  ;;  %v2070_v14 = vadd.f32 %v4139_v48, %v2069_v10  ;;  %v3313_v15 = vpop.f32.mrb[6].mxu0  ;;  %v3441_v16 = vpop.f32.mrb[6].mxu1  ;;  %v3726_v9 = vld [vmem:[%s3918_s24 + $0x3f8] sm:$0xff]  }
 0x129   : > { %2570 = vst.msk [vmem:[%s4146_s26 + $0x30] sm:$0xff] %vm1122_vm0, %v1566_v7  ;;  %2698 = vst.msk [vmem:[%s4146_s26 + $0x430] sm:$0xff] %vm1122_vm0, %v2078_v8  ;;  %v1569_v19 = vadd.f32 %v3313_v15, %v4139_v48  ;;  %v2081_v20 = vadd.f32 %v3441_v16, %v4139_v48  ;;  %v1560_v21 = vpop.f32.mrb[7].mxu0  ;;  %v2072_v22 = vpop.f32.mrb[7].mxu1  ;;  %v3725_v8 = vld [vmem:[%s3918_s24 + $0x1f8] sm:$0xff]  }
 0x12a   : > { %2568 = vst.msk [vmem:[%s4146_s26 + $0x20] sm:$0xff] %vm1122_vm0, %v1558_v13  ;;  %2696 = vst.msk [vmem:[%s4146_s26 + $0x420] sm:$0xff] %vm1122_vm0, %v2070_v14  ;;  %v1561_v23 = vadd.f32 %v4139_v48, %v1560_v21  ;;  %v2073_v24 = vadd.f32 %v4139_v48, %v2072_v22 }
 0x12b   : > { %2571 = vst.msk [vmem:[%s4146_s26 + $0x38] sm:$0xff] %vm1122_vm0, %v1569_v19  ;;  %2699 = vst.msk [vmem:[%s4146_s26 + $0x438] sm:$0xff] %vm1122_vm0, %v2081_v20  ;;  %3419 = vmatmul.mubr.msk.bf16.gmra.mrb[112].mxu0 %vm1122_vm0, %v3713_v11  ;;  %3547 = vmatmul.mubr.msk.bf16.gmra.mrb[112].mxu1 %vm1122_vm0, %v3714_v12 }
 0x12c   : > { %2569 = vst.msk [vmem:[%s4146_s26 + $0x28] sm:$0xff] %vm1122_vm0, %v1561_v23  ;;  %2697 = vst.msk [vmem:[%s4146_s26 + $0x428] sm:$0xff] %vm1122_vm0, %v2073_v24  ;;  %3422 = vmatprep.mubr.msk.bf16.mxu0 %vm1122_vm0, %v3715_v17  ;;  %3550 = vmatprep.mubr.msk.bf16.mxu1 %vm1122_vm0, %v3716_v18 }
 0x12e   : > { %v3316_v25 = vpop.f32.mrb[8].mxu0  ;;  %v3444_v26 = vpop.f32.mrb[8].mxu1 }
 0x12f   : > { %v1582_v27 = vadd.f32 %v3316_v25, %v4139_v48  ;;  %v2094_v28 = vadd.f32 %v3444_v26, %v4139_v48  ;;  %v1573_v29 = vpop.f32.mrb[9].mxu0  ;;  %v2085_v30 = vpop.f32.mrb[9].mxu1 }
 0x130   : > { %v1574_v33 = vadd.f32 %v4139_v48, %v1573_v29  ;;  %v2086_v34 = vadd.f32 %v4139_v48, %v2085_v30  ;;  %v3317_v35 = vpop.f32.mrb[10].mxu0  ;;  %v3445_v36 = vpop.f32.mrb[10].mxu1 }
 0x131   : > { %2574 = vst.msk [vmem:[%s4146_s26 + $0x50] sm:$0xff] %vm1122_vm0, %v1582_v27  ;;  %2702 = vst.msk [vmem:[%s4146_s26 + $0x450] sm:$0xff] %vm1122_vm0, %v2094_v28  ;;  %v1585_v39 = vadd.f32 %v3317_v35, %v4139_v48  ;;  %v2097_v40 = vadd.f32 %v3445_v36, %v4139_v48  ;;  %v1576_v41 = vpop.f32.mrb[11].mxu0  ;;  %v2088_v42 = vpop.f32.mrb[11].mxu1 }
 0x132   : > { %2572 = vst.msk [vmem:[%s4146_s26 + $0x40] sm:$0xff] %vm1122_vm0, %v1574_v33  ;;  %2700 = vst.msk [vmem:[%s4146_s26 + $0x440] sm:$0xff] %vm1122_vm0, %v2086_v34  ;;  %v1577_v43 = vadd.f32 %v4139_v48, %v1576_v41  ;;  %v2089_v44 = vadd.f32 %v4139_v48, %v2088_v42 }
 0x133   : > { %2575 = vst.msk [vmem:[%s4146_s26 + $0x58] sm:$0xff] %vm1122_vm0, %v1585_v39  ;;  %2703 = vst.msk [vmem:[%s4146_s26 + $0x458] sm:$0xff] %vm1122_vm0, %v2097_v40  ;;  %3423 = vmatmul.mubr.msk.bf16.gmra.mrb[116].mxu0 %vm1122_vm0, %v3717_v31  ;;  %3551 = vmatmul.mubr.msk.bf16.gmra.mrb[116].mxu1 %vm1122_vm0, %v3718_v32 }
 0x134   : > { %2573 = vst.msk [vmem:[%s4146_s26 + $0x48] sm:$0xff] %vm1122_vm0, %v1577_v43  ;;  %2701 = vst.msk [vmem:[%s4146_s26 + $0x448] sm:$0xff] %vm1122_vm0, %v2089_v44  ;;  %3426 = vmatprep.mubr.msk.bf16.mxu0 %vm1122_vm0, %v3719_v37  ;;  %3554 = vmatprep.mubr.msk.bf16.mxu1 %vm1122_vm0, %v3720_v38 }
 0x136   : > { %v3320_v45 = vpop.f32.mrb[12].mxu0  ;;  %v3448_v46 = vpop.f32.mrb[12].mxu1 }
 0x137   : > { %v1598_v47 = vadd.f32 %v3320_v45, %v4139_v48  ;;  %v2110_v49 = vadd.f32 %v3448_v46, %v4139_v48  ;;  %v1589_v50 = vpop.f32.mrb[13].mxu0  ;;  %v2101_v51 = vpop.f32.mrb[13].mxu1 }
 0x138   : > { %v1590_v54 = vadd.f32 %v4139_v48, %v1589_v50  ;;  %v2102_v55 = vadd.f32 %v4139_v48, %v2101_v51  ;;  %v3321_v56 = vpop.f32.mrb[14].mxu0  ;;  %v3449_v57 = vpop.f32.mrb[14].mxu1 }
 0x139   : > { %2578 = vst.msk [vmem:[%s4146_s26 + $0x70] sm:$0xff] %vm1122_vm0, %v1598_v47  ;;  %2706 = vst.msk [vmem:[%s4146_s26 + $0x470] sm:$0xff] %vm1122_vm0, %v2110_v49  ;;  %v1601_v60 = vadd.f32 %v3321_v56, %v4139_v48  ;;  %v2113_v61 = vadd.f32 %v3449_v57, %v4139_v48  ;;  %v1592_v62 = vpop.f32.mrb[15].mxu0  ;;  %v2104_v63 = vpop.f32.mrb[15].mxu1 }
 0x13a   : > { %2576 = vst.msk [vmem:[%s4146_s26 + $0x60] sm:$0xff] %vm1122_vm0, %v1590_v54  ;;  %2704 = vst.msk [vmem:[%s4146_s26 + $0x460] sm:$0xff] %vm1122_vm0, %v2102_v55  ;;  %v1593_v0 = vadd.f32 %v4139_v48, %v1592_v62  ;;  %v2105_v1 = vadd.f32 %v4139_v48, %v2104_v63 }
 0x13b   : > { %2579 = vst.msk [vmem:[%s4146_s26 + $0x78] sm:$0xff] %vm1122_vm0, %v1601_v60  ;;  %2707 = vst.msk [vmem:[%s4146_s26 + $0x478] sm:$0xff] %vm1122_vm0, %v2113_v61  ;;  %3427 = vmatmul.mubr.msk.bf16.gmra.mrb[120].mxu0 %vm1122_vm0, %v3721_v52  ;;  %3555 = vmatmul.mubr.msk.bf16.gmra.mrb[120].mxu1 %vm1122_vm0, %v3722_v53 }
 0x13c   : > { %2577 = vst.msk [vmem:[%s4146_s26 + $0x68] sm:$0xff] %vm1122_vm0, %v1593_v0  ;;  %2705 = vst.msk [vmem:[%s4146_s26 + $0x468] sm:$0xff] %vm1122_vm0, %v2105_v1  ;;  %3430 = vmatprep.mubr.msk.bf16.mxu0 %vm1122_vm0, %v3723_v58  ;;  %3558 = vmatprep.mubr.msk.bf16.mxu1 %vm1122_vm0, %v3724_v59 }
 0x13e   : > { %v3324_v2 = vpop.f32.mrb[16].mxu0  ;;  %v3452_v3 = vpop.f32.mrb[16].mxu1 }
 0x13f   : > { %v1614_v4 = vadd.f32 %v3324_v2, %v4139_v48  ;;  %v2126_v5 = vadd.f32 %v3452_v3, %v4139_v48  ;;  %v1605_v6 = vpop.f32.mrb[17].mxu0  ;;  %v2117_v7 = vpop.f32.mrb[17].mxu1 }
 0x140   : > { %v1606_v10 = vadd.f32 %v4139_v48, %v1605_v6  ;;  %v2118_v11 = vadd.f32 %v4139_v48, %v2117_v7  ;;  %v3325_v12 = vpop.f32.mrb[18].mxu0  ;;  %v3453_v13 = vpop.f32.mrb[18].mxu1 }
 0x141   : > { %2582 = vst.msk [vmem:[%s4146_s26 + $0x90] sm:$0xff] %vm1122_vm0, %v1614_v4  ;;  %2710 = vst.msk [vmem:[%s4146_s26 + $0x490] sm:$0xff] %vm1122_vm0, %v2126_v5  ;;  %v1617_v14 = vadd.f32 %v3325_v12, %v4139_v48  ;;  %v2129_v15 = vadd.f32 %v3453_v13, %v4139_v48  ;;  %v1608_v16 = vpop.f32.mrb[19].mxu0  ;;  %v2120_v17 = vpop.f32.mrb[19].mxu1 }
 0x142   : > { %2580 = vst.msk [vmem:[%s4146_s26 + $0x80] sm:$0xff] %vm1122_vm0, %v1606_v10  ;;  %2708 = vst.msk [vmem:[%s4146_s26 + $0x480] sm:$0xff] %vm1122_vm0, %v2118_v11  ;;  %v1609_v18 = vadd.f32 %v4139_v48, %v1608_v16  ;;  %v2121_v19 = vadd.f32 %v4139_v48, %v2120_v17 }
 0x143   : > { %2583 = vst.msk [vmem:[%s4146_s26 + $0x98] sm:$0xff] %vm1122_vm0, %v1617_v14  ;;  %2711 = vst.msk [vmem:[%s4146_s26 + $0x498] sm:$0xff] %vm1122_vm0, %v2129_v15  ;;  %3431 = vmatmul.mubr.msk.bf16.gmra.mrb[124].mxu0 %vm1122_vm0, %v3725_v8  ;;  %3559 = vmatmul.mubr.msk.bf16.gmra.mrb[124].mxu1 %vm1122_vm0, %v3726_v9 }
 0x144   : > { %2581 = vst.msk [vmem:[%s4146_s26 + $0x88] sm:$0xff] %vm1122_vm0, %v1609_v18  ;;  %2709 = vst.msk [vmem:[%s4146_s26 + $0x488] sm:$0xff] %vm1122_vm0, %v2121_v19 }
 0x146   : > { %v3328_v20 = vpop.f32.mrb[20].mxu0  ;;  %v3456_v21 = vpop.f32.mrb[20].mxu1 }
 0x147   : > { %v1630_v22 = vadd.f32 %v3328_v20, %v4139_v48  ;;  %v2142_v23 = vadd.f32 %v3456_v21, %v4139_v48  ;;  %v1621_v24 = vpop.f32.mrb[21].mxu0  ;;  %v2133_v25 = vpop.f32.mrb[21].mxu1 }
 0x148   : > { %v1622_v26 = vadd.f32 %v4139_v48, %v1621_v24  ;;  %v2134_v27 = vadd.f32 %v4139_v48, %v2133_v25  ;;  %v3329_v28 = vpop.f32.mrb[22].mxu0  ;;  %v3457_v29 = vpop.f32.mrb[22].mxu1 }
 0x149   : > { %2586 = vst.msk [vmem:[%s4146_s26 + $0xb0] sm:$0xff] %vm1122_vm0, %v1630_v22  ;;  %2714 = vst.msk [vmem:[%s4146_s26 + $0x4b0] sm:$0xff] %vm1122_vm0, %v2142_v23  ;;  %v1633_v30 = vadd.f32 %v3329_v28, %v4139_v48  ;;  %v2145_v31 = vadd.f32 %v3457_v29, %v4139_v48  ;;  %v1624_v32 = vpop.f32.mrb[23].mxu0  ;;  %v2136_v33 = vpop.f32.mrb[23].mxu1 }
 0x14a   : > { %2584 = vst.msk [vmem:[%s4146_s26 + $0xa0] sm:$0xff] %vm1122_vm0, %v1622_v26  ;;  %2712 = vst.msk [vmem:[%s4146_s26 + $0x4a0] sm:$0xff] %vm1122_vm0, %v2134_v27  ;;  %v1625_v34 = vadd.f32 %v4139_v48, %v1624_v32  ;;  %v2137_v35 = vadd.f32 %v4139_v48, %v2136_v33 }
 0x14b   : > { %2587 = vst.msk [vmem:[%s4146_s26 + $0xb8] sm:$0xff] %vm1122_vm0, %v1633_v30  ;;  %2715 = vst.msk [vmem:[%s4146_s26 + $0x4b8] sm:$0xff] %vm1122_vm0, %v2145_v31 }
 0x14c   : > { %2585 = vst.msk [vmem:[%s4146_s26 + $0xa8] sm:$0xff] %vm1122_vm0, %v1625_v34  ;;  %2713 = vst.msk [vmem:[%s4146_s26 + $0x4a8] sm:$0xff] %vm1122_vm0, %v2137_v35 }
 0x14e   : > { %v3332_v36 = vpop.f32.mrb[24].mxu0  ;;  %v3460_v37 = vpop.f32.mrb[24].mxu1 }
 0x14f   : > { %v1646_v38 = vadd.f32 %v3332_v36, %v4139_v48  ;;  %v2158_v39 = vadd.f32 %v3460_v37, %v4139_v48  ;;  %v1637_v40 = vpop.f32.mrb[25].mxu0  ;;  %v2149_v41 = vpop.f32.mrb[25].mxu1 }
 0x150   : > { %v1638_v42 = vadd.f32 %v4139_v48, %v1637_v40  ;;  %v2150_v43 = vadd.f32 %v4139_v48, %v2149_v41  ;;  %v3333_v44 = vpop.f32.mrb[26].mxu0  ;;  %v3461_v45 = vpop.f32.mrb[26].mxu1 }
 0x151   : > { %2590 = vst.msk [vmem:[%s4146_s26 + $0xd0] sm:$0xff] %vm1122_vm0, %v1646_v38  ;;  %2718 = vst.msk [vmem:[%s4146_s26 + $0x4d0] sm:$0xff] %vm1122_vm0, %v2158_v39  ;;  %v1649_v46 = vadd.f32 %v3333_v44, %v4139_v48  ;;  %v2161_v47 = vadd.f32 %v3461_v45, %v4139_v48  ;;  %v1640_v49 = vpop.f32.mrb[27].mxu0  ;;  %v2152_v50 = vpop.f32.mrb[27].mxu1 }
 0x152   : > { %2588 = vst.msk [vmem:[%s4146_s26 + $0xc0] sm:$0xff] %vm1122_vm0, %v1638_v42  ;;  %2716 = vst.msk [vmem:[%s4146_s26 + $0x4c0] sm:$0xff] %vm1122_vm0, %v2150_v43  ;;  %v1641_v51 = vadd.f32 %v4139_v48, %v1640_v49  ;;  %v2153_v52 = vadd.f32 %v4139_v48, %v2152_v50 }
 0x153   : > { %2591 = vst.msk [vmem:[%s4146_s26 + $0xd8] sm:$0xff] %vm1122_vm0, %v1649_v46  ;;  %2719 = vst.msk [vmem:[%s4146_s26 + $0x4d8] sm:$0xff] %vm1122_vm0, %v2161_v47 }
 0x154   : > { %2589 = vst.msk [vmem:[%s4146_s26 + $0xc8] sm:$0xff] %vm1122_vm0, %v1641_v51  ;;  %2717 = vst.msk [vmem:[%s4146_s26 + $0x4c8] sm:$0xff] %vm1122_vm0, %v2153_v52 }
 0x156   : > { %v3336_v53 = vpop.f32.mrb[28].mxu0  ;;  %v3464_v54 = vpop.f32.mrb[28].mxu1 }
 0x157   : > { %v1662_v55 = vadd.f32 %v3336_v53, %v4139_v48  ;;  %v2174_v56 = vadd.f32 %v3464_v54, %v4139_v48  ;;  %v1653_v57 = vpop.f32.mrb[29].mxu0  ;;  %v2165_v58 = vpop.f32.mrb[29].mxu1 }
 0x158   : > { %v1654_v59 = vadd.f32 %v4139_v48, %v1653_v57  ;;  %v2166_v60 = vadd.f32 %v4139_v48, %v2165_v58  ;;  %v3337_v61 = vpop.f32.mrb[30].mxu0  ;;  %v3465_v62 = vpop.f32.mrb[30].mxu1 }
 0x159   : > { %2594 = vst.msk [vmem:[%s4146_s26 + $0xf0] sm:$0xff] %vm1122_vm0, %v1662_v55  ;;  %2722 = vst.msk [vmem:[%s4146_s26 + $0x4f0] sm:$0xff] %vm1122_vm0, %v2174_v56  ;;  %v1665_v63 = vadd.f32 %v3337_v61, %v4139_v48  ;;  %v2177_v0 = vadd.f32 %v3465_v62, %v4139_v48  ;;  %v1656_v1 = vpop.f32.mrb[31].mxu0  ;;  %v2168_v2 = vpop.f32.mrb[31].mxu1 }
 0x15a   : > { %2592 = vst.msk [vmem:[%s4146_s26 + $0xe0] sm:$0xff] %vm1122_vm0, %v1654_v59  ;;  %2720 = vst.msk [vmem:[%s4146_s26 + $0x4e0] sm:$0xff] %vm1122_vm0, %v2166_v60  ;;  %v1657_v3 = vadd.f32 %v4139_v48, %v1656_v1  ;;  %v2169_v4 = vadd.f32 %v4139_v48, %v2168_v2 }
 0x15b   : > { %2595 = vst.msk [vmem:[%s4146_s26 + $0xf8] sm:$0xff] %vm1122_vm0, %v1665_v63  ;;  %2723 = vst.msk [vmem:[%s4146_s26 + $0x4f8] sm:$0xff] %vm1122_vm0, %v2177_v0 }
 0x15c   : > { %2593 = vst.msk [vmem:[%s4146_s26 + $0xe8] sm:$0xff] %vm1122_vm0, %v1657_v3  ;;  %2721 = vst.msk [vmem:[%s4146_s26 + $0x4e8] sm:$0xff] %vm1122_vm0, %v2169_v4 }
 0x15e   : > { %v3340_v5 = vpop.f32.mrb[32].mxu0  ;;  %v3468_v6 = vpop.f32.mrb[32].mxu1 }
 0x15f   : > { %v1678_v7 = vadd.f32 %v3340_v5, %v4139_v48  ;;  %v2190_v8 = vadd.f32 %v3468_v6, %v4139_v48  ;;  %v1669_v9 = vpop.f32.mrb[33].mxu0  ;;  %v2181_v10 = vpop.f32.mrb[33].mxu1 }
 0x160   : > { %v1670_v11 = vadd.f32 %v4139_v48, %v1669_v9  ;;  %v2182_v12 = vadd.f32 %v4139_v48, %v2181_v10  ;;  %v3341_v13 = vpop.f32.mrb[34].mxu0  ;;  %v3469_v14 = vpop.f32.mrb[34].mxu1 }
 0x161   : > { %2598 = vst.msk [vmem:[%s4146_s26 + $0x110] sm:$0xff] %vm1122_vm0, %v1678_v7  ;;  %2726 = vst.msk [vmem:[%s4146_s26 + $0x510] sm:$0xff] %vm1122_vm0, %v2190_v8  ;;  %v1681_v15 = vadd.f32 %v3341_v13, %v4139_v48  ;;  %v2193_v16 = vadd.f32 %v3469_v14, %v4139_v48  ;;  %v1672_v17 = vpop.f32.mrb[35].mxu0  ;;  %v2184_v18 = vpop.f32.mrb[35].mxu1 }
 0x162   : > { %2596 = vst.msk [vmem:[%s4146_s26 + $0x100] sm:$0xff] %vm1122_vm0, %v1670_v11  ;;  %2724 = vst.msk [vmem:[%s4146_s26 + $0x500] sm:$0xff] %vm1122_vm0, %v2182_v12  ;;  %v1673_v19 = vadd.f32 %v4139_v48, %v1672_v17  ;;  %v2185_v20 = vadd.f32 %v4139_v48, %v2184_v18 }
 0x163   : > { %2599 = vst.msk [vmem:[%s4146_s26 + $0x118] sm:$0xff] %vm1122_vm0, %v1681_v15  ;;  %2727 = vst.msk [vmem:[%s4146_s26 + $0x518] sm:$0xff] %vm1122_vm0, %v2193_v16 }
 0x164   : > { %2597 = vst.msk [vmem:[%s4146_s26 + $0x108] sm:$0xff] %vm1122_vm0, %v1673_v19  ;;  %2725 = vst.msk [vmem:[%s4146_s26 + $0x508] sm:$0xff] %vm1122_vm0, %v2185_v20 }
 0x166   : > { %v3344_v21 = vpop.f32.mrb[36].mxu0  ;;  %v3472_v22 = vpop.f32.mrb[36].mxu1 }
 0x167   : > { %v1694_v23 = vadd.f32 %v3344_v21, %v4139_v48  ;;  %v2206_v24 = vadd.f32 %v3472_v22, %v4139_v48  ;;  %v1685_v25 = vpop.f32.mrb[37].mxu0  ;;  %v2197_v26 = vpop.f32.mrb[37].mxu1 }
 0x168   : > { %v1686_v27 = vadd.f32 %v4139_v48, %v1685_v25  ;;  %v2198_v28 = vadd.f32 %v4139_v48, %v2197_v26  ;;  %v3345_v29 = vpop.f32.mrb[38].mxu0  ;;  %v3473_v30 = vpop.f32.mrb[38].mxu1 }
 0x169   : > { %2602 = vst.msk [vmem:[%s4146_s26 + $0x130] sm:$0xff] %vm1122_vm0, %v1694_v23  ;;  %2730 = vst.msk [vmem:[%s4146_s26 + $0x530] sm:$0xff] %vm1122_vm0, %v2206_v24  ;;  %v1697_v31 = vadd.f32 %v3345_v29, %v4139_v48  ;;  %v2209_v32 = vadd.f32 %v3473_v30, %v4139_v48  ;;  %v1688_v33 = vpop.f32.mrb[39].mxu0  ;;  %v2200_v34 = vpop.f32.mrb[39].mxu1 }
 0x16a   : > { %2600 = vst.msk [vmem:[%s4146_s26 + $0x120] sm:$0xff] %vm1122_vm0, %v1686_v27  ;;  %2728 = vst.msk [vmem:[%s4146_s26 + $0x520] sm:$0xff] %vm1122_vm0, %v2198_v28  ;;  %v1689_v35 = vadd.f32 %v4139_v48, %v1688_v33  ;;  %v2201_v36 = vadd.f32 %v4139_v48, %v2200_v34 }
 0x16b   : > { %2603 = vst.msk [vmem:[%s4146_s26 + $0x138] sm:$0xff] %vm1122_vm0, %v1697_v31  ;;  %2731 = vst.msk [vmem:[%s4146_s26 + $0x538] sm:$0xff] %vm1122_vm0, %v2209_v32 }
 0x16c   : > { %2601 = vst.msk [vmem:[%s4146_s26 + $0x128] sm:$0xff] %vm1122_vm0, %v1689_v35  ;;  %2729 = vst.msk [vmem:[%s4146_s26 + $0x528] sm:$0xff] %vm1122_vm0, %v2201_v36 }
 0x16e   : > { %v3348_v37 = vpop.f32.mrb[40].mxu0  ;;  %v3476_v38 = vpop.f32.mrb[40].mxu1 }
 0x16f   : > { %v1710_v39 = vadd.f32 %v3348_v37, %v4139_v48  ;;  %v2222_v40 = vadd.f32 %v3476_v38, %v4139_v48  ;;  %v1701_v41 = vpop.f32.mrb[41].mxu0  ;;  %v2213_v42 = vpop.f32.mrb[41].mxu1 }
 0x170   : > { %v1702_v43 = vadd.f32 %v4139_v48, %v1701_v41  ;;  %v2214_v44 = vadd.f32 %v4139_v48, %v2213_v42  ;;  %v3349_v45 = vpop.f32.mrb[42].mxu0  ;;  %v3477_v46 = vpop.f32.mrb[42].mxu1 }
 0x171   : > { %2606 = vst.msk [vmem:[%s4146_s26 + $0x150] sm:$0xff] %vm1122_vm0, %v1710_v39  ;;  %2734 = vst.msk [vmem:[%s4146_s26 + $0x550] sm:$0xff] %vm1122_vm0, %v2222_v40  ;;  %v1713_v47 = vadd.f32 %v3349_v45, %v4139_v48  ;;  %v2225_v49 = vadd.f32 %v3477_v46, %v4139_v48  ;;  %v1704_v50 = vpop.f32.mrb[43].mxu0  ;;  %v2216_v51 = vpop.f32.mrb[43].mxu1 }
 0x172   : > { %2604 = vst.msk [vmem:[%s4146_s26 + $0x140] sm:$0xff] %vm1122_vm0, %v1702_v43  ;;  %2732 = vst.msk [vmem:[%s4146_s26 + $0x540] sm:$0xff] %vm1122_vm0, %v2214_v44  ;;  %v1705_v52 = vadd.f32 %v4139_v48, %v1704_v50  ;;  %v2217_v53 = vadd.f32 %v4139_v48, %v2216_v51 }
 0x173   : > { %2607 = vst.msk [vmem:[%s4146_s26 + $0x158] sm:$0xff] %vm1122_vm0, %v1713_v47  ;;  %2735 = vst.msk [vmem:[%s4146_s26 + $0x558] sm:$0xff] %vm1122_vm0, %v2225_v49 }
 0x174   : > { %2605 = vst.msk [vmem:[%s4146_s26 + $0x148] sm:$0xff] %vm1122_vm0, %v1705_v52  ;;  %2733 = vst.msk [vmem:[%s4146_s26 + $0x548] sm:$0xff] %vm1122_vm0, %v2217_v53 }
 0x176   : > { %v3352_v54 = vpop.f32.mrb[44].mxu0  ;;  %v3480_v55 = vpop.f32.mrb[44].mxu1 }
 0x177   : > { %v1726_v56 = vadd.f32 %v3352_v54, %v4139_v48  ;;  %v2238_v57 = vadd.f32 %v3480_v55, %v4139_v48  ;;  %v1717_v58 = vpop.f32.mrb[45].mxu0  ;;  %v2229_v59 = vpop.f32.mrb[45].mxu1 }
 0x178   : > { %v1718_v60 = vadd.f32 %v4139_v48, %v1717_v58  ;;  %v2230_v61 = vadd.f32 %v4139_v48, %v2229_v59  ;;  %v3353_v62 = vpop.f32.mrb[46].mxu0  ;;  %v3481_v63 = vpop.f32.mrb[46].mxu1 }
 0x179   : > { %2610 = vst.msk [vmem:[%s4146_s26 + $0x170] sm:$0xff] %vm1122_vm0, %v1726_v56  ;;  %2738 = vst.msk [vmem:[%s4146_s26 + $0x570] sm:$0xff] %vm1122_vm0, %v2238_v57  ;;  %v1729_v0 = vadd.f32 %v3353_v62, %v4139_v48  ;;  %v2241_v1 = vadd.f32 %v3481_v63, %v4139_v48  ;;  %v1720_v2 = vpop.f32.mrb[47].mxu0  ;;  %v2232_v3 = vpop.f32.mrb[47].mxu1 }
 0x17a   : > { %2608 = vst.msk [vmem:[%s4146_s26 + $0x160] sm:$0xff] %vm1122_vm0, %v1718_v60  ;;  %2736 = vst.msk [vmem:[%s4146_s26 + $0x560] sm:$0xff] %vm1122_vm0, %v2230_v61  ;;  %v1721_v4 = vadd.f32 %v4139_v48, %v1720_v2  ;;  %v2233_v5 = vadd.f32 %v4139_v48, %v2232_v3 }
 0x17b   : > { %2611 = vst.msk [vmem:[%s4146_s26 + $0x178] sm:$0xff] %vm1122_vm0, %v1729_v0  ;;  %2739 = vst.msk [vmem:[%s4146_s26 + $0x578] sm:$0xff] %vm1122_vm0, %v2241_v1 }
 0x17c   : > { %2609 = vst.msk [vmem:[%s4146_s26 + $0x168] sm:$0xff] %vm1122_vm0, %v1721_v4  ;;  %2737 = vst.msk [vmem:[%s4146_s26 + $0x568] sm:$0xff] %vm1122_vm0, %v2233_v5 }
 0x17e   : > { %v3356_v6 = vpop.f32.mrb[48].mxu0  ;;  %v3484_v7 = vpop.f32.mrb[48].mxu1 }
 0x17f   : > { %v1742_v8 = vadd.f32 %v3356_v6, %v4139_v48  ;;  %v2254_v9 = vadd.f32 %v3484_v7, %v4139_v48  ;;  %v1733_v10 = vpop.f32.mrb[49].mxu0  ;;  %v2245_v11 = vpop.f32.mrb[49].mxu1 }
 0x180   : > { %v1734_v12 = vadd.f32 %v4139_v48, %v1733_v10  ;;  %v2246_v13 = vadd.f32 %v4139_v48, %v2245_v11  ;;  %v3357_v14 = vpop.f32.mrb[50].mxu0  ;;  %v3485_v15 = vpop.f32.mrb[50].mxu1 }
 0x181   : > { %2614 = vst.msk [vmem:[%s4146_s26 + $0x190] sm:$0xff] %vm1122_vm0, %v1742_v8  ;;  %2742 = vst.msk [vmem:[%s4146_s26 + $0x590] sm:$0xff] %vm1122_vm0, %v2254_v9  ;;  %v1745_v16 = vadd.f32 %v3357_v14, %v4139_v48  ;;  %v2257_v17 = vadd.f32 %v3485_v15, %v4139_v48  ;;  %v1736_v18 = vpop.f32.mrb[51].mxu0  ;;  %v2248_v19 = vpop.f32.mrb[51].mxu1 }
 0x182   : > { %2612 = vst.msk [vmem:[%s4146_s26 + $0x180] sm:$0xff] %vm1122_vm0, %v1734_v12  ;;  %2740 = vst.msk [vmem:[%s4146_s26 + $0x580] sm:$0xff] %vm1122_vm0, %v2246_v13  ;;  %v1737_v20 = vadd.f32 %v4139_v48, %v1736_v18  ;;  %v2249_v21 = vadd.f32 %v4139_v48, %v2248_v19 }
 0x183   : > { %2615 = vst.msk [vmem:[%s4146_s26 + $0x198] sm:$0xff] %vm1122_vm0, %v1745_v16  ;;  %2743 = vst.msk [vmem:[%s4146_s26 + $0x598] sm:$0xff] %vm1122_vm0, %v2257_v17 }
 0x184   : > { %2613 = vst.msk [vmem:[%s4146_s26 + $0x188] sm:$0xff] %vm1122_vm0, %v1737_v20  ;;  %2741 = vst.msk [vmem:[%s4146_s26 + $0x588] sm:$0xff] %vm1122_vm0, %v2249_v21 }
 0x186   : > { %v3360_v22 = vpop.f32.mrb[52].mxu0  ;;  %v3488_v23 = vpop.f32.mrb[52].mxu1 }
 0x187   : > { %v1758_v24 = vadd.f32 %v3360_v22, %v4139_v48  ;;  %v2270_v25 = vadd.f32 %v3488_v23, %v4139_v48  ;;  %v1749_v26 = vpop.f32.mrb[53].mxu0  ;;  %v2261_v27 = vpop.f32.mrb[53].mxu1 }
 0x188   : > { %v1750_v28 = vadd.f32 %v4139_v48, %v1749_v26  ;;  %v2262_v29 = vadd.f32 %v4139_v48, %v2261_v27  ;;  %v3361_v30 = vpop.f32.mrb[54].mxu0  ;;  %v3489_v31 = vpop.f32.mrb[54].mxu1 }
 0x189   : > { %2618 = vst.msk [vmem:[%s4146_s26 + $0x1b0] sm:$0xff] %vm1122_vm0, %v1758_v24  ;;  %2746 = vst.msk [vmem:[%s4146_s26 + $0x5b0] sm:$0xff] %vm1122_vm0, %v2270_v25  ;;  %v1761_v32 = vadd.f32 %v3361_v30, %v4139_v48  ;;  %v2273_v33 = vadd.f32 %v3489_v31, %v4139_v48  ;;  %v1752_v34 = vpop.f32.mrb[55].mxu0  ;;  %v2264_v35 = vpop.f32.mrb[55].mxu1 }
 0x18a   : > { %2616 = vst.msk [vmem:[%s4146_s26 + $0x1a0] sm:$0xff] %vm1122_vm0, %v1750_v28  ;;  %2744 = vst.msk [vmem:[%s4146_s26 + $0x5a0] sm:$0xff] %vm1122_vm0, %v2262_v29  ;;  %v1753_v36 = vadd.f32 %v4139_v48, %v1752_v34  ;;  %v2265_v37 = vadd.f32 %v4139_v48, %v2264_v35 }
 0x18b   : > { %2619 = vst.msk [vmem:[%s4146_s26 + $0x1b8] sm:$0xff] %vm1122_vm0, %v1761_v32  ;;  %2747 = vst.msk [vmem:[%s4146_s26 + $0x5b8] sm:$0xff] %vm1122_vm0, %v2273_v33 }
 0x18c   : > { %2617 = vst.msk [vmem:[%s4146_s26 + $0x1a8] sm:$0xff] %vm1122_vm0, %v1753_v36  ;;  %2745 = vst.msk [vmem:[%s4146_s26 + $0x5a8] sm:$0xff] %vm1122_vm0, %v2265_v37 }
 0x18e   : > { %v3364_v38 = vpop.f32.mrb[56].mxu0  ;;  %v3492_v39 = vpop.f32.mrb[56].mxu1 }
 0x18f   : > { %v1774_v40 = vadd.f32 %v3364_v38, %v4139_v48  ;;  %v2286_v41 = vadd.f32 %v3492_v39, %v4139_v48  ;;  %v1765_v42 = vpop.f32.mrb[57].mxu0  ;;  %v2277_v43 = vpop.f32.mrb[57].mxu1 }
 0x190   : > { %v1766_v44 = vadd.f32 %v4139_v48, %v1765_v42  ;;  %v2278_v45 = vadd.f32 %v4139_v48, %v2277_v43  ;;  %v3365_v46 = vpop.f32.mrb[58].mxu0  ;;  %v3493_v47 = vpop.f32.mrb[58].mxu1 }
 0x191   : > { %2622 = vst.msk [vmem:[%s4146_s26 + $0x1d0] sm:$0xff] %vm1122_vm0, %v1774_v40  ;;  %2750 = vst.msk [vmem:[%s4146_s26 + $0x5d0] sm:$0xff] %vm1122_vm0, %v2286_v41  ;;  %v1777_v49 = vadd.f32 %v3365_v46, %v4139_v48  ;;  %v2289_v50 = vadd.f32 %v3493_v47, %v4139_v48  ;;  %v1768_v51 = vpop.f32.mrb[59].mxu0  ;;  %v2280_v52 = vpop.f32.mrb[59].mxu1 }
 0x192   : > { %2620 = vst.msk [vmem:[%s4146_s26 + $0x1c0] sm:$0xff] %vm1122_vm0, %v1766_v44  ;;  %2748 = vst.msk [vmem:[%s4146_s26 + $0x5c0] sm:$0xff] %vm1122_vm0, %v2278_v45  ;;  %v1769_v53 = vadd.f32 %v4139_v48, %v1768_v51  ;;  %v2281_v54 = vadd.f32 %v4139_v48, %v2280_v52 }
 0x193   : > { %2623 = vst.msk [vmem:[%s4146_s26 + $0x1d8] sm:$0xff] %vm1122_vm0, %v1777_v49  ;;  %2751 = vst.msk [vmem:[%s4146_s26 + $0x5d8] sm:$0xff] %vm1122_vm0, %v2289_v50 }
 0x194   : > { %2621 = vst.msk [vmem:[%s4146_s26 + $0x1c8] sm:$0xff] %vm1122_vm0, %v1769_v53  ;;  %2749 = vst.msk [vmem:[%s4146_s26 + $0x5c8] sm:$0xff] %vm1122_vm0, %v2281_v54 }
 0x196   : > { %v3368_v55 = vpop.f32.mrb[60].mxu0  ;;  %v3496_v56 = vpop.f32.mrb[60].mxu1 }
 0x197   : > { %v1790_v57 = vadd.f32 %v3368_v55, %v4139_v48  ;;  %v2302_v58 = vadd.f32 %v3496_v56, %v4139_v48  ;;  %v1781_v59 = vpop.f32.mrb[61].mxu0  ;;  %v2293_v60 = vpop.f32.mrb[61].mxu1 }
 0x198   : > { %v1782_v61 = vadd.f32 %v4139_v48, %v1781_v59  ;;  %v2294_v62 = vadd.f32 %v4139_v48, %v2293_v60  ;;  %v3369_v63 = vpop.f32.mrb[62].mxu0  ;;  %v3497_v0 = vpop.f32.mrb[62].mxu1 }
 0x199   : > { %2626 = vst.msk [vmem:[%s4146_s26 + $0x1f0] sm:$0xff] %vm1122_vm0, %v1790_v57  ;;  %2754 = vst.msk [vmem:[%s4146_s26 + $0x5f0] sm:$0xff] %vm1122_vm0, %v2302_v58  ;;  %v1793_v1 = vadd.f32 %v3369_v63, %v4139_v48  ;;  %v2305_v2 = vadd.f32 %v3497_v0, %v4139_v48  ;;  %v1784_v3 = vpop.f32.mrb[63].mxu0  ;;  %v2296_v4 = vpop.f32.mrb[63].mxu1 }
 0x19a   : > { %2624 = vst.msk [vmem:[%s4146_s26 + $0x1e0] sm:$0xff] %vm1122_vm0, %v1782_v61  ;;  %2752 = vst.msk [vmem:[%s4146_s26 + $0x5e0] sm:$0xff] %vm1122_vm0, %v2294_v62  ;;  %v1785_v5 = vadd.f32 %v4139_v48, %v1784_v3  ;;  %v2297_v6 = vadd.f32 %v4139_v48, %v2296_v4 }
 0x19b   : > { %2627 = vst.msk [vmem:[%s4146_s26 + $0x1f8] sm:$0xff] %vm1122_vm0, %v1793_v1  ;;  %2755 = vst.msk [vmem:[%s4146_s26 + $0x5f8] sm:$0xff] %vm1122_vm0, %v2305_v2 }
 0x19c   : > { %2625 = vst.msk [vmem:[%s4146_s26 + $0x1e8] sm:$0xff] %vm1122_vm0, %v1785_v5  ;;  %2753 = vst.msk [vmem:[%s4146_s26 + $0x5e8] sm:$0xff] %vm1122_vm0, %v2297_v6  ;;  %v4654_v6 = vld [vmem:[#allocation4] ss:$0 sm:$0xff] }
 0x19e   : > { %v3372_v7 = vpop.f32.mrb[64].mxu0  ;;  %v3500_v8 = vpop.f32.mrb[64].mxu1 }
 0x19f   : > { %v1806_v9 = vadd.f32 %v3372_v7, %v4139_v48  ;;  %v2318_v10 = vadd.f32 %v3500_v8, %v4139_v48  ;;  %v1797_v11 = vpop.f32.mrb[65].mxu0  ;;  %v2309_v12 = vpop.f32.mrb[65].mxu1 }
 0x1a0   : > { %v1798_v13 = vadd.f32 %v4139_v48, %v1797_v11  ;;  %v2310_v14 = vadd.f32 %v4139_v48, %v2309_v12  ;;  %v3373_v15 = vpop.f32.mrb[66].mxu0  ;;  %v3501_v16 = vpop.f32.mrb[66].mxu1 }
 0x1a1   : > { %2630 = vst.msk [vmem:[%s4146_s26 + $0x210] sm:$0xff] %vm1122_vm0, %v1806_v9  ;;  %2758 = vst.msk [vmem:[%s4146_s26 + $0x610] sm:$0xff] %vm1122_vm0, %v2318_v10  ;;  %v1809_v17 = vadd.f32 %v3373_v15, %v4139_v48  ;;  %v2321_v18 = vadd.f32 %v3501_v16, %v4139_v48  ;;  %v1800_v19 = vpop.f32.mrb[67].mxu0  ;;  %v2312_v20 = vpop.f32.mrb[67].mxu1 }
 0x1a2   : > { %2628 = vst.msk [vmem:[%s4146_s26 + $0x200] sm:$0xff] %vm1122_vm0, %v1798_v13  ;;  %2756 = vst.msk [vmem:[%s4146_s26 + $0x600] sm:$0xff] %vm1122_vm0, %v2310_v14  ;;  %v1801_v21 = vadd.f32 %v4139_v48, %v1800_v19  ;;  %v2313_v22 = vadd.f32 %v4139_v48, %v2312_v20 }
 0x1a3   : > { %2631 = vst.msk [vmem:[%s4146_s26 + $0x218] sm:$0xff] %vm1122_vm0, %v1809_v17  ;;  %2759 = vst.msk [vmem:[%s4146_s26 + $0x618] sm:$0xff] %vm1122_vm0, %v2321_v18 }
 0x1a4   : > { %2629 = vst.msk [vmem:[%s4146_s26 + $0x208] sm:$0xff] %vm1122_vm0, %v1801_v21  ;;  %2757 = vst.msk [vmem:[%s4146_s26 + $0x608] sm:$0xff] %vm1122_vm0, %v2313_v22 }
 0x1a6   : > { %v3376_v23 = vpop.f32.mrb[68].mxu0  ;;  %v3504_v24 = vpop.f32.mrb[68].mxu1 }
 0x1a7   : > { %v1822_v25 = vadd.f32 %v3376_v23, %v4139_v48  ;;  %v2334_v26 = vadd.f32 %v3504_v24, %v4139_v48  ;;  %v1813_v27 = vpop.f32.mrb[69].mxu0  ;;  %v2325_v28 = vpop.f32.mrb[69].mxu1 }
 0x1a8   : > { %v1814_v29 = vadd.f32 %v4139_v48, %v1813_v27  ;;  %v2326_v30 = vadd.f32 %v4139_v48, %v2325_v28  ;;  %v3377_v31 = vpop.f32.mrb[70].mxu0  ;;  %v3505_v32 = vpop.f32.mrb[70].mxu1 }
 0x1a9   : > { %2634 = vst.msk [vmem:[%s4146_s26 + $0x230] sm:$0xff] %vm1122_vm0, %v1822_v25  ;;  %2762 = vst.msk [vmem:[%s4146_s26 + $0x630] sm:$0xff] %vm1122_vm0, %v2334_v26  ;;  %v1825_v33 = vadd.f32 %v3377_v31, %v4139_v48  ;;  %v2337_v34 = vadd.f32 %v3505_v32, %v4139_v48  ;;  %v1816_v35 = vpop.f32.mrb[71].mxu0  ;;  %v2328_v36 = vpop.f32.mrb[71].mxu1 }
 0x1aa   : > { %2632 = vst.msk [vmem:[%s4146_s26 + $0x220] sm:$0xff] %vm1122_vm0, %v1814_v29  ;;  %2760 = vst.msk [vmem:[%s4146_s26 + $0x620] sm:$0xff] %vm1122_vm0, %v2326_v30  ;;  %v1817_v37 = vadd.f32 %v4139_v48, %v1816_v35  ;;  %v2329_v38 = vadd.f32 %v4139_v48, %v2328_v36 }
 0x1ab   : > { %2635 = vst.msk [vmem:[%s4146_s26 + $0x238] sm:$0xff] %vm1122_vm0, %v1825_v33  ;;  %2763 = vst.msk [vmem:[%s4146_s26 + $0x638] sm:$0xff] %vm1122_vm0, %v2337_v34 }
 0x1ac   : > { %2633 = vst.msk [vmem:[%s4146_s26 + $0x228] sm:$0xff] %vm1122_vm0, %v1817_v37  ;;  %2761 = vst.msk [vmem:[%s4146_s26 + $0x628] sm:$0xff] %vm1122_vm0, %v2329_v38 }
 0x1ae   : > { %v3380_v39 = vpop.f32.mrb[72].mxu0  ;;  %v3508_v40 = vpop.f32.mrb[72].mxu1 }
 0x1af   : > { %v1838_v41 = vadd.f32 %v3380_v39, %v4139_v48  ;;  %v2350_v42 = vadd.f32 %v3508_v40, %v4139_v48  ;;  %v1829_v43 = vpop.f32.mrb[73].mxu0  ;;  %v2341_v44 = vpop.f32.mrb[73].mxu1 }
 0x1b0   : > { %v1830_v45 = vadd.f32 %v4139_v48, %v1829_v43  ;;  %v2342_v46 = vadd.f32 %v4139_v48, %v2341_v44  ;;  %v3381_v47 = vpop.f32.mrb[74].mxu0  ;;  %v3509_v49 = vpop.f32.mrb[74].mxu1 }
 0x1b1   : > { %2638 = vst.msk [vmem:[%s4146_s26 + $0x250] sm:$0xff] %vm1122_vm0, %v1838_v41  ;;  %2766 = vst.msk [vmem:[%s4146_s26 + $0x650] sm:$0xff] %vm1122_vm0, %v2350_v42  ;;  %v1841_v50 = vadd.f32 %v3381_v47, %v4139_v48  ;;  %v2353_v51 = vadd.f32 %v3509_v49, %v4139_v48  ;;  %v1832_v52 = vpop.f32.mrb[75].mxu0  ;;  %v2344_v53 = vpop.f32.mrb[75].mxu1 }
 0x1b2   : > { %2636 = vst.msk [vmem:[%s4146_s26 + $0x240] sm:$0xff] %vm1122_vm0, %v1830_v45  ;;  %2764 = vst.msk [vmem:[%s4146_s26 + $0x640] sm:$0xff] %vm1122_vm0, %v2342_v46  ;;  %v1833_v54 = vadd.f32 %v4139_v48, %v1832_v52  ;;  %v2345_v55 = vadd.f32 %v4139_v48, %v2344_v53 }
 0x1b3   : > { %2639 = vst.msk [vmem:[%s4146_s26 + $0x258] sm:$0xff] %vm1122_vm0, %v1841_v50  ;;  %2767 = vst.msk [vmem:[%s4146_s26 + $0x658] sm:$0xff] %vm1122_vm0, %v2353_v51 }
 0x1b4   : > { %2637 = vst.msk [vmem:[%s4146_s26 + $0x248] sm:$0xff] %vm1122_vm0, %v1833_v54  ;;  %2765 = vst.msk [vmem:[%s4146_s26 + $0x648] sm:$0xff] %vm1122_vm0, %v2345_v55 }
 0x1b6   : > { %v3384_v56 = vpop.f32.mrb[76].mxu0  ;;  %v3512_v57 = vpop.f32.mrb[76].mxu1 }
 0x1b7   : > { %v1854_v58 = vadd.f32 %v3384_v56, %v4139_v48  ;;  %v2366_v59 = vadd.f32 %v3512_v57, %v4139_v48  ;;  %v1845_v60 = vpop.f32.mrb[77].mxu0  ;;  %v2357_v61 = vpop.f32.mrb[77].mxu1 }
 0x1b8   : > { %v1846_v62 = vadd.f32 %v4139_v48, %v1845_v60  ;;  %v2358_v63 = vadd.f32 %v4139_v48, %v2357_v61  ;;  %v3385_v0 = vpop.f32.mrb[78].mxu0  ;;  %v3513_v1 = vpop.f32.mrb[78].mxu1 }
 0x1b9   : > { %2642 = vst.msk [vmem:[%s4146_s26 + $0x270] sm:$0xff] %vm1122_vm0, %v1854_v58  ;;  %2770 = vst.msk [vmem:[%s4146_s26 + $0x670] sm:$0xff] %vm1122_vm0, %v2366_v59  ;;  %v1857_v2 = vadd.f32 %v3385_v0, %v4139_v48  ;;  %v2369_v3 = vadd.f32 %v3513_v1, %v4139_v48  ;;  %v1848_v4 = vpop.f32.mrb[79].mxu0  ;;  %v2360_v5 = vpop.f32.mrb[79].mxu1 }
 0x1ba   : > { %2640 = vst.msk [vmem:[%s4146_s26 + $0x260] sm:$0xff] %vm1122_vm0, %v1846_v62  ;;  %2768 = vst.msk [vmem:[%s4146_s26 + $0x660] sm:$0xff] %vm1122_vm0, %v2358_v63  ;;  %v1849_v7 = vadd.f32 %v4654_v6, %v1848_v4  ;;  %v2361_v8 = vadd.f32 %v4654_v6, %v2360_v5 }
 0x1bb   : > { %2643 = vst.msk [vmem:[%s4146_s26 + $0x278] sm:$0xff] %vm1122_vm0, %v1857_v2  ;;  %2771 = vst.msk [vmem:[%s4146_s26 + $0x678] sm:$0xff] %vm1122_vm0, %v2369_v3 }
 0x1bc   : > { %2641 = vst.msk [vmem:[%s4146_s26 + $0x268] sm:$0xff] %vm1122_vm0, %v1849_v7  ;;  %2769 = vst.msk [vmem:[%s4146_s26 + $0x668] sm:$0xff] %vm1122_vm0, %v2361_v8 }
 0x1be   : > { %v3388_v48 = vpop.f32.mrb[80].mxu0  ;;  %v3516_v9 = vpop.f32.mrb[80].mxu1 }
 0x1bf   : > { %v1870_v10 = vadd.f32 %v4654_v6, %v3388_v48  ;;  %v2382_v11 = vadd.f32 %v4654_v6, %v3516_v9  ;;  %v1861_v12 = vpop.f32.mrb[81].mxu0  ;;  %v2373_v13 = vpop.f32.mrb[81].mxu1 }
 0x1c0   : > { %v1862_v14 = vadd.f32 %v4654_v6, %v1861_v12  ;;  %v2374_v15 = vadd.f32 %v4654_v6, %v2373_v13  ;;  %v3389_v16 = vpop.f32.mrb[82].mxu0  ;;  %v3517_v17 = vpop.f32.mrb[82].mxu1 }
 0x1c1   : > { %2646 = vst.msk [vmem:[%s4146_s26 + $0x290] sm:$0xff] %vm1122_vm0, %v1870_v10  ;;  %2774 = vst.msk [vmem:[%s4146_s26 + $0x690] sm:$0xff] %vm1122_vm0, %v2382_v11  ;;  %v1873_v18 = vadd.f32 %v4654_v6, %v3389_v16  ;;  %v2385_v19 = vadd.f32 %v4654_v6, %v3517_v17  ;;  %v1864_v20 = vpop.f32.mrb[83].mxu0  ;;  %v2376_v21 = vpop.f32.mrb[83].mxu1 }
 0x1c2   : > { %2644 = vst.msk [vmem:[%s4146_s26 + $0x280] sm:$0xff] %vm1122_vm0, %v1862_v14  ;;  %2772 = vst.msk [vmem:[%s4146_s26 + $0x680] sm:$0xff] %vm1122_vm0, %v2374_v15  ;;  %v1865_v22 = vadd.f32 %v4654_v6, %v1864_v20  ;;  %v2377_v23 = vadd.f32 %v4654_v6, %v2376_v21 }
 0x1c3   : > { %2647 = vst.msk [vmem:[%s4146_s26 + $0x298] sm:$0xff] %vm1122_vm0, %v1873_v18  ;;  %2775 = vst.msk [vmem:[%s4146_s26 + $0x698] sm:$0xff] %vm1122_vm0, %v2385_v19 }
 0x1c4   : > { %2645 = vst.msk [vmem:[%s4146_s26 + $0x288] sm:$0xff] %vm1122_vm0, %v1865_v22  ;;  %2773 = vst.msk [vmem:[%s4146_s26 + $0x688] sm:$0xff] %vm1122_vm0, %v2377_v23 }
 0x1c6   : > { %v3392_v24 = vpop.f32.mrb[84].mxu0  ;;  %v3520_v25 = vpop.f32.mrb[84].mxu1 }
 0x1c7   : > { %v1886_v26 = vadd.f32 %v4654_v6, %v3392_v24  ;;  %v2398_v27 = vadd.f32 %v4654_v6, %v3520_v25  ;;  %v1877_v28 = vpop.f32.mrb[85].mxu0  ;;  %v2389_v29 = vpop.f32.mrb[85].mxu1 }
 0x1c8   : > { %v1878_v30 = vadd.f32 %v4654_v6, %v1877_v28  ;;  %v2390_v31 = vadd.f32 %v4654_v6, %v2389_v29  ;;  %v3393_v32 = vpop.f32.mrb[86].mxu0  ;;  %v3521_v33 = vpop.f32.mrb[86].mxu1 }
 0x1c9   : > { %2650 = vst.msk [vmem:[%s4146_s26 + $0x2b0] sm:$0xff] %vm1122_vm0, %v1886_v26  ;;  %2778 = vst.msk [vmem:[%s4146_s26 + $0x6b0] sm:$0xff] %vm1122_vm0, %v2398_v27  ;;  %v1889_v34 = vadd.f32 %v4654_v6, %v3393_v32  ;;  %v2401_v35 = vadd.f32 %v4654_v6, %v3521_v33  ;;  %v1880_v36 = vpop.f32.mrb[87].mxu0  ;;  %v2392_v37 = vpop.f32.mrb[87].mxu1 }
 0x1ca   : > { %2648 = vst.msk [vmem:[%s4146_s26 + $0x2a0] sm:$0xff] %vm1122_vm0, %v1878_v30  ;;  %2776 = vst.msk [vmem:[%s4146_s26 + $0x6a0] sm:$0xff] %vm1122_vm0, %v2390_v31  ;;  %v1881_v38 = vadd.f32 %v4654_v6, %v1880_v36  ;;  %v2393_v39 = vadd.f32 %v4654_v6, %v2392_v37 }
 0x1cb   : > { %2651 = vst.msk [vmem:[%s4146_s26 + $0x2b8] sm:$0xff] %vm1122_vm0, %v1889_v34  ;;  %2779 = vst.msk [vmem:[%s4146_s26 + $0x6b8] sm:$0xff] %vm1122_vm0, %v2401_v35 }
 0x1cc   : > { %2649 = vst.msk [vmem:[%s4146_s26 + $0x2a8] sm:$0xff] %vm1122_vm0, %v1881_v38  ;;  %2777 = vst.msk [vmem:[%s4146_s26 + $0x6a8] sm:$0xff] %vm1122_vm0, %v2393_v39 }
 0x1ce   : > { %v3396_v40 = vpop.f32.mrb[88].mxu0  ;;  %v3524_v41 = vpop.f32.mrb[88].mxu1 }
 0x1cf   : > { %v1902_v42 = vadd.f32 %v4654_v6, %v3396_v40  ;;  %v2414_v43 = vadd.f32 %v4654_v6, %v3524_v41  ;;  %v1893_v44 = vpop.f32.mrb[89].mxu0  ;;  %v2405_v45 = vpop.f32.mrb[89].mxu1 }
 0x1d0   : > { %v1894_v46 = vadd.f32 %v4654_v6, %v1893_v44  ;;  %v2406_v47 = vadd.f32 %v4654_v6, %v2405_v45  ;;  %v3397_v49 = vpop.f32.mrb[90].mxu0  ;;  %v3525_v50 = vpop.f32.mrb[90].mxu1 }
 0x1d1   : > { %2654 = vst.msk [vmem:[%s4146_s26 + $0x2d0] sm:$0xff] %vm1122_vm0, %v1902_v42  ;;  %2782 = vst.msk [vmem:[%s4146_s26 + $0x6d0] sm:$0xff] %vm1122_vm0, %v2414_v43  ;;  %v1905_v51 = vadd.f32 %v4654_v6, %v3397_v49  ;;  %v2417_v52 = vadd.f32 %v4654_v6, %v3525_v50  ;;  %v1896_v53 = vpop.f32.mrb[91].mxu0  ;;  %v2408_v54 = vpop.f32.mrb[91].mxu1 }
 0x1d2   : > { %2652 = vst.msk [vmem:[%s4146_s26 + $0x2c0] sm:$0xff] %vm1122_vm0, %v1894_v46  ;;  %2780 = vst.msk [vmem:[%s4146_s26 + $0x6c0] sm:$0xff] %vm1122_vm0, %v2406_v47  ;;  %v1897_v55 = vadd.f32 %v4654_v6, %v1896_v53  ;;  %v2409_v56 = vadd.f32 %v4654_v6, %v2408_v54 }
 0x1d3   : > { %2655 = vst.msk [vmem:[%s4146_s26 + $0x2d8] sm:$0xff] %vm1122_vm0, %v1905_v51  ;;  %2783 = vst.msk [vmem:[%s4146_s26 + $0x6d8] sm:$0xff] %vm1122_vm0, %v2417_v52 }
 0x1d4   : > { %2653 = vst.msk [vmem:[%s4146_s26 + $0x2c8] sm:$0xff] %vm1122_vm0, %v1897_v55  ;;  %2781 = vst.msk [vmem:[%s4146_s26 + $0x6c8] sm:$0xff] %vm1122_vm0, %v2409_v56 }
 0x1d6   : > { %v3400_v57 = vpop.f32.mrb[92].mxu0  ;;  %v3528_v58 = vpop.f32.mrb[92].mxu1 }
 0x1d7   : > { %v1918_v59 = vadd.f32 %v4654_v6, %v3400_v57  ;;  %v2430_v60 = vadd.f32 %v4654_v6, %v3528_v58  ;;  %v1909_v61 = vpop.f32.mrb[93].mxu0  ;;  %v2421_v62 = vpop.f32.mrb[93].mxu1 }
 0x1d8   : > { %v1910_v63 = vadd.f32 %v4654_v6, %v1909_v61  ;;  %v2422_v0 = vadd.f32 %v4654_v6, %v2421_v62  ;;  %v3401_v1 = vpop.f32.mrb[94].mxu0  ;;  %v3529_v2 = vpop.f32.mrb[94].mxu1 }
 0x1d9   : > { %2658 = vst.msk [vmem:[%s4146_s26 + $0x2f0] sm:$0xff] %vm1122_vm0, %v1918_v59  ;;  %2786 = vst.msk [vmem:[%s4146_s26 + $0x6f0] sm:$0xff] %vm1122_vm0, %v2430_v60  ;;  %v1921_v3 = vadd.f32 %v4654_v6, %v3401_v1  ;;  %v2433_v4 = vadd.f32 %v4654_v6, %v3529_v2  ;;  %v1912_v5 = vpop.f32.mrb[95].mxu0  ;;  %v2424_v7 = vpop.f32.mrb[95].mxu1 }
 0x1da   : > { %2656 = vst.msk [vmem:[%s4146_s26 + $0x2e0] sm:$0xff] %vm1122_vm0, %v1910_v63  ;;  %2784 = vst.msk [vmem:[%s4146_s26 + $0x6e0] sm:$0xff] %vm1122_vm0, %v2422_v0  ;;  %v1913_v8 = vadd.f32 %v4654_v6, %v1912_v5  ;;  %v2425_v48 = vadd.f32 %v4654_v6, %v2424_v7 }
 0x1db   : > { %2659 = vst.msk [vmem:[%s4146_s26 + $0x2f8] sm:$0xff] %vm1122_vm0, %v1921_v3  ;;  %2787 = vst.msk [vmem:[%s4146_s26 + $0x6f8] sm:$0xff] %vm1122_vm0, %v2433_v4 }
 0x1dc   : > { %2657 = vst.msk [vmem:[%s4146_s26 + $0x2e8] sm:$0xff] %vm1122_vm0, %v1913_v8  ;;  %2785 = vst.msk [vmem:[%s4146_s26 + $0x6e8] sm:$0xff] %vm1122_vm0, %v2425_v48 }
 0x1de   : > { %v3404_v9 = vpop.f32.mrb[96].mxu0  ;;  %v3532_v10 = vpop.f32.mrb[96].mxu1 }
 0x1df   : > { %v1934_v11 = vadd.f32 %v4654_v6, %v3404_v9  ;;  %v2446_v12 = vadd.f32 %v4654_v6, %v3532_v10  ;;  %v1925_v13 = vpop.f32.mrb[97].mxu0  ;;  %v2437_v14 = vpop.f32.mrb[97].mxu1 }
 0x1e0   : > { %v1926_v15 = vadd.f32 %v4654_v6, %v1925_v13  ;;  %v2438_v16 = vadd.f32 %v4654_v6, %v2437_v14  ;;  %v3405_v17 = vpop.f32.mrb[98].mxu0  ;;  %v3533_v18 = vpop.f32.mrb[98].mxu1 }
 0x1e1   : > { %2662 = vst.msk [vmem:[%s4146_s26 + $0x310] sm:$0xff] %vm1122_vm0, %v1934_v11  ;;  %2790 = vst.msk [vmem:[%s4146_s26 + $0x710] sm:$0xff] %vm1122_vm0, %v2446_v12  ;;  %v1937_v19 = vadd.f32 %v4654_v6, %v3405_v17  ;;  %v2449_v20 = vadd.f32 %v4654_v6, %v3533_v18  ;;  %v1928_v21 = vpop.f32.mrb[99].mxu0  ;;  %v2440_v22 = vpop.f32.mrb[99].mxu1 }
 0x1e2   : > { %2660 = vst.msk [vmem:[%s4146_s26 + $0x300] sm:$0xff] %vm1122_vm0, %v1926_v15  ;;  %2788 = vst.msk [vmem:[%s4146_s26 + $0x700] sm:$0xff] %vm1122_vm0, %v2438_v16  ;;  %v1929_v23 = vadd.f32 %v4654_v6, %v1928_v21  ;;  %v2441_v24 = vadd.f32 %v4654_v6, %v2440_v22 }
 0x1e3   : > { %2663 = vst.msk [vmem:[%s4146_s26 + $0x318] sm:$0xff] %vm1122_vm0, %v1937_v19  ;;  %2791 = vst.msk [vmem:[%s4146_s26 + $0x718] sm:$0xff] %vm1122_vm0, %v2449_v20 }
 0x1e4   : > { %2661 = vst.msk [vmem:[%s4146_s26 + $0x308] sm:$0xff] %vm1122_vm0, %v1929_v23  ;;  %2789 = vst.msk [vmem:[%s4146_s26 + $0x708] sm:$0xff] %vm1122_vm0, %v2441_v24 }
 0x1e6   : > { %v3408_v25 = vpop.f32.mrb[100].mxu0  ;;  %v3536_v26 = vpop.f32.mrb[100].mxu1 }
 0x1e7   : > { %v1950_v27 = vadd.f32 %v4654_v6, %v3408_v25  ;;  %v2462_v28 = vadd.f32 %v4654_v6, %v3536_v26  ;;  %v1941_v29 = vpop.f32.mrb[101].mxu0  ;;  %v2453_v30 = vpop.f32.mrb[101].mxu1 }
 0x1e8   : > { %v1942_v31 = vadd.f32 %v4654_v6, %v1941_v29  ;;  %v2454_v32 = vadd.f32 %v4654_v6, %v2453_v30  ;;  %v3409_v33 = vpop.f32.mrb[102].mxu0  ;;  %v3537_v34 = vpop.f32.mrb[102].mxu1 }
 0x1e9   : > { %2666 = vst.msk [vmem:[%s4146_s26 + $0x330] sm:$0xff] %vm1122_vm0, %v1950_v27  ;;  %2794 = vst.msk [vmem:[%s4146_s26 + $0x730] sm:$0xff] %vm1122_vm0, %v2462_v28  ;;  %v1953_v35 = vadd.f32 %v4654_v6, %v3409_v33  ;;  %v2465_v36 = vadd.f32 %v4654_v6, %v3537_v34  ;;  %v1944_v37 = vpop.f32.mrb[103].mxu0  ;;  %v2456_v38 = vpop.f32.mrb[103].mxu1 }
 0x1ea   : > { %2664 = vst.msk [vmem:[%s4146_s26 + $0x320] sm:$0xff] %vm1122_vm0, %v1942_v31  ;;  %2792 = vst.msk [vmem:[%s4146_s26 + $0x720] sm:$0xff] %vm1122_vm0, %v2454_v32  ;;  %v1945_v39 = vadd.f32 %v4654_v6, %v1944_v37  ;;  %v2457_v40 = vadd.f32 %v4654_v6, %v2456_v38 }
 0x1eb   : > { %2667 = vst.msk [vmem:[%s4146_s26 + $0x338] sm:$0xff] %vm1122_vm0, %v1953_v35  ;;  %2795 = vst.msk [vmem:[%s4146_s26 + $0x738] sm:$0xff] %vm1122_vm0, %v2465_v36 }
 0x1ec   : > { %2665 = vst.msk [vmem:[%s4146_s26 + $0x328] sm:$0xff] %vm1122_vm0, %v1945_v39  ;;  %2793 = vst.msk [vmem:[%s4146_s26 + $0x728] sm:$0xff] %vm1122_vm0, %v2457_v40 }
 0x1ee   : > { %v3412_v41 = vpop.f32.mrb[104].mxu0  ;;  %v3540_v42 = vpop.f32.mrb[104].mxu1 }
 0x1ef   : > { %v1966_v43 = vadd.f32 %v4654_v6, %v3412_v41  ;;  %v2478_v44 = vadd.f32 %v4654_v6, %v3540_v42  ;;  %v1957_v45 = vpop.f32.mrb[105].mxu0  ;;  %v2469_v46 = vpop.f32.mrb[105].mxu1 }
 0x1f0   : > { %v1958_v47 = vadd.f32 %v4654_v6, %v1957_v45  ;;  %v2470_v49 = vadd.f32 %v4654_v6, %v2469_v46  ;;  %v3413_v50 = vpop.f32.mrb[106].mxu0  ;;  %v3541_v51 = vpop.f32.mrb[106].mxu1 }
 0x1f1   : > { %2670 = vst.msk [vmem:[%s4146_s26 + $0x350] sm:$0xff] %vm1122_vm0, %v1966_v43  ;;  %2798 = vst.msk [vmem:[%s4146_s26 + $0x750] sm:$0xff] %vm1122_vm0, %v2478_v44  ;;  %v1969_v52 = vadd.f32 %v4654_v6, %v3413_v50  ;;  %v2481_v53 = vadd.f32 %v4654_v6, %v3541_v51  ;;  %v1960_v54 = vpop.f32.mrb[107].mxu0  ;;  %v2472_v55 = vpop.f32.mrb[107].mxu1 }
 0x1f2   : > { %2668 = vst.msk [vmem:[%s4146_s26 + $0x340] sm:$0xff] %vm1122_vm0, %v1958_v47  ;;  %2796 = vst.msk [vmem:[%s4146_s26 + $0x740] sm:$0xff] %vm1122_vm0, %v2470_v49  ;;  %v1961_v56 = vadd.f32 %v4654_v6, %v1960_v54  ;;  %v2473_v57 = vadd.f32 %v4654_v6, %v2472_v55 }
 0x1f3   : > { %2671 = vst.msk [vmem:[%s4146_s26 + $0x358] sm:$0xff] %vm1122_vm0, %v1969_v52  ;;  %2799 = vst.msk [vmem:[%s4146_s26 + $0x758] sm:$0xff] %vm1122_vm0, %v2481_v53 }
 0x1f4   : > { %2669 = vst.msk [vmem:[%s4146_s26 + $0x348] sm:$0xff] %vm1122_vm0, %v1961_v56  ;;  %2797 = vst.msk [vmem:[%s4146_s26 + $0x748] sm:$0xff] %vm1122_vm0, %v2473_v57 }
 0x1f6   : > { %v3416_v58 = vpop.f32.mrb[108].mxu0  ;;  %v3544_v59 = vpop.f32.mrb[108].mxu1 }
 0x1f7   : > { %v1982_v60 = vadd.f32 %v4654_v6, %v3416_v58  ;;  %v2494_v61 = vadd.f32 %v4654_v6, %v3544_v59  ;;  %v1973_v62 = vpop.f32.mrb[109].mxu0  ;;  %v2485_v63 = vpop.f32.mrb[109].mxu1 }
 0x1f8   : > { %v1974_v0 = vadd.f32 %v4654_v6, %v1973_v62  ;;  %v2486_v1 = vadd.f32 %v4654_v6, %v2485_v63  ;;  %v3417_v2 = vpop.f32.mrb[110].mxu0  ;;  %v3545_v3 = vpop.f32.mrb[110].mxu1 }
 0x1f9   : > { %2674 = vst.msk [vmem:[%s4146_s26 + $0x370] sm:$0xff] %vm1122_vm0, %v1982_v60  ;;  %2802 = vst.msk [vmem:[%s4146_s26 + $0x770] sm:$0xff] %vm1122_vm0, %v2494_v61  ;;  %v1985_v4 = vadd.f32 %v4654_v6, %v3417_v2  ;;  %v2497_v5 = vadd.f32 %v4654_v6, %v3545_v3  ;;  %v1976_v7 = vpop.f32.mrb[111].mxu0  ;;  %v2488_v8 = vpop.f32.mrb[111].mxu1 }
 0x1fa   : > { %2672 = vst.msk [vmem:[%s4146_s26 + $0x360] sm:$0xff] %vm1122_vm0, %v1974_v0  ;;  %2800 = vst.msk [vmem:[%s4146_s26 + $0x760] sm:$0xff] %vm1122_vm0, %v2486_v1  ;;  %v1977_v48 = vadd.f32 %v4654_v6, %v1976_v7  ;;  %v2489_v9 = vadd.f32 %v4654_v6, %v2488_v8 }
 0x1fb   : > { %2675 = vst.msk [vmem:[%s4146_s26 + $0x378] sm:$0xff] %vm1122_vm0, %v1985_v4  ;;  %2803 = vst.msk [vmem:[%s4146_s26 + $0x778] sm:$0xff] %vm1122_vm0, %v2497_v5 }
 0x1fc   : > { %2673 = vst.msk [vmem:[%s4146_s26 + $0x368] sm:$0xff] %vm1122_vm0, %v1977_v48  ;;  %2801 = vst.msk [vmem:[%s4146_s26 + $0x768] sm:$0xff] %vm1122_vm0, %v2489_v9 }
 0x1fe   : > { %v3420_v10 = vpop.f32.mrb[112].mxu0  ;;  %v3548_v11 = vpop.f32.mrb[112].mxu1 }
 0x1ff   : > { %v1998_v12 = vadd.f32 %v4654_v6, %v3420_v10  ;;  %v2510_v13 = vadd.f32 %v4654_v6, %v3548_v11  ;;  %v1989_v14 = vpop.f32.mrb[113].mxu0  ;;  %v2501_v15 = vpop.f32.mrb[113].mxu1 }
 0x200   : > { %v1990_v16 = vadd.f32 %v4654_v6, %v1989_v14  ;;  %v2502_v17 = vadd.f32 %v4654_v6, %v2501_v15  ;;  %v3421_v18 = vpop.f32.mrb[114].mxu0  ;;  %v3549_v19 = vpop.f32.mrb[114].mxu1 }
 0x201   : > { %2678 = vst.msk [vmem:[%s4146_s26 + $0x390] sm:$0xff] %vm1122_vm0, %v1998_v12  ;;  %2806 = vst.msk [vmem:[%s4146_s26 + $0x790] sm:$0xff] %vm1122_vm0, %v2510_v13  ;;  %v2001_v20 = vadd.f32 %v4654_v6, %v3421_v18  ;;  %v2513_v21 = vadd.f32 %v4654_v6, %v3549_v19  ;;  %v1992_v22 = vpop.f32.mrb[115].mxu0  ;;  %v2504_v23 = vpop.f32.mrb[115].mxu1 }
 0x202   : > { %2676 = vst.msk [vmem:[%s4146_s26 + $0x380] sm:$0xff] %vm1122_vm0, %v1990_v16  ;;  %2804 = vst.msk [vmem:[%s4146_s26 + $0x780] sm:$0xff] %vm1122_vm0, %v2502_v17  ;;  %v1993_v24 = vadd.f32 %v4654_v6, %v1992_v22  ;;  %v2505_v25 = vadd.f32 %v4654_v6, %v2504_v23 }
 0x203   : > { %2679 = vst.msk [vmem:[%s4146_s26 + $0x398] sm:$0xff] %vm1122_vm0, %v2001_v20  ;;  %2807 = vst.msk [vmem:[%s4146_s26 + $0x798] sm:$0xff] %vm1122_vm0, %v2513_v21 }
 0x204   : > { %2677 = vst.msk [vmem:[%s4146_s26 + $0x388] sm:$0xff] %vm1122_vm0, %v1993_v24  ;;  %2805 = vst.msk [vmem:[%s4146_s26 + $0x788] sm:$0xff] %vm1122_vm0, %v2505_v25 }
 0x206   : > { %v3424_v26 = vpop.f32.mrb[116].mxu0  ;;  %v3552_v27 = vpop.f32.mrb[116].mxu1 }
 0x207   : > { %v2014_v28 = vadd.f32 %v4654_v6, %v3424_v26  ;;  %v2526_v29 = vadd.f32 %v4654_v6, %v3552_v27  ;;  %v2005_v30 = vpop.f32.mrb[117].mxu0  ;;  %v2517_v31 = vpop.f32.mrb[117].mxu1 }
 0x208   : > { %v2006_v32 = vadd.f32 %v4654_v6, %v2005_v30  ;;  %v2518_v33 = vadd.f32 %v4654_v6, %v2517_v31  ;;  %v3425_v34 = vpop.f32.mrb[118].mxu0  ;;  %v3553_v35 = vpop.f32.mrb[118].mxu1 }
 0x209   : > { %2682 = vst.msk [vmem:[%s4146_s26 + $0x3b0] sm:$0xff] %vm1122_vm0, %v2014_v28  ;;  %2810 = vst.msk [vmem:[%s4146_s26 + $0x7b0] sm:$0xff] %vm1122_vm0, %v2526_v29  ;;  %v2017_v36 = vadd.f32 %v4654_v6, %v3425_v34  ;;  %v2529_v37 = vadd.f32 %v4654_v6, %v3553_v35  ;;  %v2008_v38 = vpop.f32.mrb[119].mxu0  ;;  %v2520_v39 = vpop.f32.mrb[119].mxu1 }
 0x20a   : > { %2680 = vst.msk [vmem:[%s4146_s26 + $0x3a0] sm:$0xff] %vm1122_vm0, %v2006_v32  ;;  %2808 = vst.msk [vmem:[%s4146_s26 + $0x7a0] sm:$0xff] %vm1122_vm0, %v2518_v33  ;;  %v2009_v40 = vadd.f32 %v4654_v6, %v2008_v38  ;;  %v2521_v41 = vadd.f32 %v4654_v6, %v2520_v39 }
 0x20b   : > { %2683 = vst.msk [vmem:[%s4146_s26 + $0x3b8] sm:$0xff] %vm1122_vm0, %v2017_v36  ;;  %2811 = vst.msk [vmem:[%s4146_s26 + $0x7b8] sm:$0xff] %vm1122_vm0, %v2529_v37 }
 0x20c   : > { %2681 = vst.msk [vmem:[%s4146_s26 + $0x3a8] sm:$0xff] %vm1122_vm0, %v2009_v40  ;;  %2809 = vst.msk [vmem:[%s4146_s26 + $0x7a8] sm:$0xff] %vm1122_vm0, %v2521_v41 }
 0x20e   : > { %v3428_v42 = vpop.f32.mrb[120].mxu0  ;;  %v3556_v43 = vpop.f32.mrb[120].mxu1 }
 0x20f   : > { %v2030_v44 = vadd.f32 %v4654_v6, %v3428_v42  ;;  %v2542_v45 = vadd.f32 %v4654_v6, %v3556_v43  ;;  %v2021_v46 = vpop.f32.mrb[121].mxu0  ;;  %v2533_v47 = vpop.f32.mrb[121].mxu1 }
 0x210   : > { %v2022_v49 = vadd.f32 %v4654_v6, %v2021_v46  ;;  %v2534_v50 = vadd.f32 %v4654_v6, %v2533_v47  ;;  %v3429_v51 = vpop.f32.mrb[122].mxu0  ;;  %v3557_v52 = vpop.f32.mrb[122].mxu1 }
 0x211   : > { %2686 = vst.msk [vmem:[%s4146_s26 + $0x3d0] sm:$0xff] %vm1122_vm0, %v2030_v44  ;;  %2814 = vst.msk [vmem:[%s4146_s26 + $0x7d0] sm:$0xff] %vm1122_vm0, %v2542_v45  ;;  %v2033_v53 = vadd.f32 %v4654_v6, %v3429_v51  ;;  %v2545_v54 = vadd.f32 %v4654_v6, %v3557_v52  ;;  %v2024_v55 = vpop.f32.mrb[123].mxu0  ;;  %v2536_v56 = vpop.f32.mrb[123].mxu1 }
 0x212   : > { %2684 = vst.msk [vmem:[%s4146_s26 + $0x3c0] sm:$0xff] %vm1122_vm0, %v2022_v49  ;;  %2812 = vst.msk [vmem:[%s4146_s26 + $0x7c0] sm:$0xff] %vm1122_vm0, %v2534_v50  ;;  %v2025_v57 = vadd.f32 %v4654_v6, %v2024_v55  ;;  %v2537_v58 = vadd.f32 %v4654_v6, %v2536_v56 }
 0x213   : > { %2687 = vst.msk [vmem:[%s4146_s26 + $0x3d8] sm:$0xff] %vm1122_vm0, %v2033_v53  ;;  %2815 = vst.msk [vmem:[%s4146_s26 + $0x7d8] sm:$0xff] %vm1122_vm0, %v2545_v54 }
 0x214   : > { %2685 = vst.msk [vmem:[%s4146_s26 + $0x3c8] sm:$0xff] %vm1122_vm0, %v2025_v57  ;;  %2813 = vst.msk [vmem:[%s4146_s26 + $0x7c8] sm:$0xff] %vm1122_vm0, %v2537_v58 }
 0x216   : > { %v3432_v59 = vpop.f32.mrb[124].mxu0  ;;  %v3560_v60 = vpop.f32.mrb[124].mxu1 }
 0x217   : > { %v2046_v61 = vadd.f32 %v4654_v6, %v3432_v59  ;;  %v2558_v62 = vadd.f32 %v4654_v6, %v3560_v60  ;;  %v2037_v63 = vpop.f32.mrb[125].mxu0  ;;  %v2549_v0 = vpop.f32.mrb[125].mxu1 }
 0x218   : > { %v2038_v1 = vadd.f32 %v4654_v6, %v2037_v63  ;;  %v2550_v2 = vadd.f32 %v4654_v6, %v2549_v0  ;;  %v3433_v3 = vpop.f32.mrb[126].mxu0  ;;  %v3561_v4 = vpop.f32.mrb[126].mxu1 }
 0x219   : > { %2690 = vst.msk [vmem:[%s4146_s26 + $0x3f0] sm:$0xff] %vm1122_vm0, %v2046_v61  ;;  %2818 = vst.msk [vmem:[%s4146_s26 + $0x7f0] sm:$0xff] %vm1122_vm0, %v2558_v62  ;;  %v2049_v5 = vadd.f32 %v4654_v6, %v3433_v3  ;;  %v2561_v7 = vadd.f32 %v4654_v6, %v3561_v4  ;;  %v2040_v8 = vpop.f32.mrb[127].mxu0  ;;  %v2552_v48 = vpop.f32.mrb[127].mxu1 }
 0x21a   : > { %2688 = vst.msk [vmem:[%s4146_s26 + $0x3e0] sm:$0xff] %vm1122_vm0, %v2038_v1  ;;  %2816 = vst.msk [vmem:[%s4146_s26 + $0x7e0] sm:$0xff] %vm1122_vm0, %v2550_v2  ;;  %v2041_v9 = vadd.f32 %v4654_v6, %v2040_v8  ;;  %v2553_v10 = vadd.f32 %v4654_v6, %v2552_v48 }
 0x21b   : > { %2691 = vst.msk [vmem:[%s4146_s26 + $0x3f8] sm:$0xff] %vm1122_vm0, %v2049_v5  ;;  %2819 = vst.msk [vmem:[%s4146_s26 + $0x7f8] sm:$0xff] %vm1122_vm0, %v2561_v7 }
 0x21c   : > { %2689 = vst.msk [vmem:[%s4146_s26 + $0x3e8] sm:$0xff] %vm1122_vm0, %v2041_v9  ;;  %2817 = vst.msk [vmem:[%s4146_s26 + $0x7e8] sm:$0xff] %vm1122_vm0, %v2553_v10 }
 0x21d PF: > { %s15_s12 = sadd.s32 1, %s3798_s12  }
 0x21e   : > { %p12_p5 = scmp.ge.s32.totalorder %s15_s12, 4  }
 0x220   :  { %14 = sbr.rel (!%p12_p5) target bundleno = 2 (0x2), region = 71 }
 0x227   :  { %2842 = vsyncpa [#allocation3], 1 }
 0x228   :  { %2844 = vsyncpa [#allocation3 + $0x1], 1 }
 0x229   :  { %2845 = vsyncpa [#allocation5], 1 }

</bundles_post_ra>
